<compile_context>
chip_gen: v7x
topology: tpu7x:2x2x1
jax: 0.10.0
libtpu: 0.0.40
codegen_flags: <defaults>
</compile_context>

<pallas_src>
import jax
import jax.numpy as jnp
from jax import lax
from jax.experimental import pallas as pl
from jax.experimental.pallas import tpu as pltpu


def spam_lstm_kernel(ids_ref, emb_ref, wih_ref, whh_ref, b_ref, wfc_ref, bfc_ref,
                     out_ref):
    TB = ids_ref.shape[0]            # T * BB rows, time-major within the batch block
    BB = out_ref.shape[0]            # padded batch block (multiple of 8)
    T = TB // BB
    H = whh_ref.shape[0]
    V_pad = emb_ref.shape[0]

    # --- Fused embedding lookup: one_hot(ids) @ embedding on the MXU.
    #     (Valid because the vocab is tiny; removes the XLA gather op.)
    ids = ids_ref[...]                                                # (TB, 1) int32
    vocab_iota = lax.broadcasted_iota(jnp.int32, (TB, V_pad), 1)
    onehot = (ids == vocab_iota).astype(jnp.bfloat16)                 # (TB, V_pad)
    x = jnp.dot(onehot, emb_ref[...],
                preferred_element_type=jnp.float32).astype(jnp.bfloat16)  # (TB, E_pad)

    # --- Hoisted input projection: one bf16 MXU matmul for all timesteps,
    #     combined bias (b_ih + b_hh) folded in.  Gate layout: i | f | o | g.
    gx = jnp.dot(x, wih_ref[...], preferred_element_type=jnp.float32) + b_ref[...]

    h = jnp.zeros((BB, H), jnp.float32)
    c = jnp.zeros((BB, H), jnp.float32)

    # --- Recurrence: fully unrolled (T static); every slice is 8-sublane aligned.
    for t in range(T):
        gates = gx[t * BB:(t + 1) * BB, :] + jnp.dot(
            h.astype(jnp.bfloat16), whh_ref[...],
            preferred_element_type=jnp.float32)                       # (BB, 4H) f32
        s = jax.nn.sigmoid(gates[:, :3 * H])      # i|f|o in one wide EUP pass
        i_g = s[:, 0 * H:1 * H]
        f_g = s[:, 1 * H:2 * H]
        o_g = s[:, 2 * H:3 * H]
        g_g = jnp.tanh(gates[:, 3 * H:])
        c = f_g * c + i_g * g_g
        h = o_g * jnp.tanh(c)

    # --- fc(lstm_out[:, -1, :]) with output_dim == 1:
    #     VPU multiply + lane reduction (avoids an N=1 MXU matmul epilogue).
    out_ref[...] = (jnp.sum(h * wfc_ref[...], axis=-1, keepdims=True)
                    + bfc_ref[...])


def _vmem_budget_bytes(T, BB, V_pad, E_pad, H):
    """Explicit per-call VMEM budget (review: make it explicit for v7x's 64 MiB)."""
    f32, bf16 = 4, 2
    tb = T * BB
    weights = ((V_pad * E_pad + E_pad * 4 * H + H * 4 * H) * bf16
               + (4 * H + H + 1) * f32)
    io = tb * 4 + BB * f32                                   # ids block + out block
    inter = tb * (V_pad * bf16 + E_pad * bf16 + 4 * H * f32) + 8 * BB * H * f32
    total = weights + 2 * io + inter                         # double-buffered I/O
    return int(min(max(2 * total, 16 << 20), 40 << 20))


@jax.jit
def spam_detector_forward(x_ids, params):
    """x_ids: (B, T) int32 token ids.  Returns (B, 1) float32 logits."""
    B, T = x_ids.shape
    emb = params["emb_kernel"]
    wih = params["w_ih_kernel"]
    whh = params["w_hh_kernel"]
    b = params["b_kernel"]
    wfc = params["w_fc_row"]
    bfc = params["b_fc"]
    V_pad, E_pad = emb.shape
    H, G = whh.shape

    # Batch block: multiple of 8 sublanes, growing toward 256 for serving batches
    # so the MXU M dim fills up and (via the parallel grid) both v7x TCs are used.
    BB = min(256, -(-B // 8) * 8)
    B_pad = -(-B // BB) * BB
    nblk = B_pad // BB

    # Tiny int-id plumbing only (no big-tensor transpose): pad batch rows with
    # id 0 (dead rows, discarded below) and lay ids out time-major per block.
    ids = jnp.pad(x_ids.astype(jnp.int32), ((0, B_pad - B), (0, 0)))    # (B_pad, T)
    ids_tm = (ids.reshape(nblk, BB, T)
                 .transpose(0, 2, 1)
                 .reshape(nblk * T * BB, 1))                            # rows: blk,t,b

    out = pl.pallas_call(
        spam_lstm_kernel,
        out_shape=jax.ShapeDtypeStruct((B_pad, 1), jnp.float32),
        grid=(nblk,),
        in_specs=[
            pl.BlockSpec((T * BB, 1), lambda j: (j, 0)),   # ids (per batch block)
            pl.BlockSpec((V_pad, E_pad), lambda j: (0, 0)),  # embedding (resident)
            pl.BlockSpec((E_pad, G), lambda j: (0, 0)),      # W_ih^T
            pl.BlockSpec((H, G), lambda j: (0, 0)),          # W_hh^T
            pl.BlockSpec((1, G), lambda j: (0, 0)),          # b_ih + b_hh
            pl.BlockSpec((1, H), lambda j: (0, 0)),          # fc weight row
            pl.BlockSpec((1, 1), lambda j: (0, 0)),          # fc bias
        ],
        out_specs=pl.BlockSpec((BB, 1), lambda j: (j, 0)),
        compiler_params=pltpu.CompilerParams(
            dimension_semantics=("parallel",),
            vmem_limit_bytes=_vmem_budget_bytes(T, BB, V_pad, E_pad, H),
        ),
    )(ids_tm, emb, wih, whh, b, wfc, bfc)
    return out[:B]


def init_params(key, vocab_size, embedding_dim, hidden_dim, output_dim):
    assert output_dim == 1, "kernel fc path is specialized for output_dim == 1"
    H = hidden_dim
    ks = jax.random.split(key, 7)
    scale = 1.0 / jnp.sqrt(hidden_dim)
    emb = jax.random.normal(ks[0], (vocab_size, embedding_dim), jnp.float32)
    # PyTorch layout: weight_ih (4H, E), weight_hh (4H, H), gate order i|f|g|o;
    # kept pre-transposed here for right-multiplication.
    w_ih_t = jax.random.uniform(ks[1], (embedding_dim, 4 * H), jnp.float32, -scale, scale)
    w_hh_t = jax.random.uniform(ks[2], (H, 4 * H), jnp.float32, -scale, scale)
    b_ih = jax.random.uniform(ks[3], (4 * H,), jnp.float32, -scale, scale)
    b_hh = jax.random.uniform(ks[4], (4 * H,), jnp.float32, -scale, scale)
    w_fc_t = jax.random.uniform(ks[5], (H, output_dim), jnp.float32, -scale, scale)
    b_fc = jax.random.uniform(ks[6], (1, output_dim), jnp.float32, -scale, scale)

    def to_ifog(a):
        # Reorder last axis from PyTorch i|f|g|o to kernel i|f|o|g so the three
        # sigmoid gates are contiguous (one wide EUP sigmoid per step).
        return jnp.concatenate([a[..., :2 * H], a[..., 3 * H:], a[..., 2 * H:3 * H]],
                               axis=-1)

    # Lane-dense padding (zeros): E -> multiple of 128, vocab -> multiple of 128.
    e_pad = -(-embedding_dim // 128) * 128
    v_pad = -(-vocab_size // 128) * 128
    emb_kernel = jnp.pad(
        emb, ((0, v_pad - vocab_size), (0, e_pad - embedding_dim))).astype(jnp.bfloat16)
    w_ih_kernel = jnp.pad(
        to_ifog(w_ih_t), ((0, e_pad - embedding_dim), (0, 0))).astype(jnp.bfloat16)
    w_hh_kernel = to_ifog(w_hh_t).astype(jnp.bfloat16)
    b_kernel = to_ifog(b_ih + b_hh).reshape(1, 4 * H)        # f32 (gate math stays f32)

    return {
        # kernel-layout params (bf16 matmul operands, i|f|o|g gate order)
        "emb_kernel": emb_kernel,       # (V_pad, E_pad) bf16
        "w_ih_kernel": w_ih_kernel,     # (E_pad, 4H)    bf16
        "w_hh_kernel": w_hh_kernel,     # (H, 4H)        bf16
        "b_kernel": b_kernel,           # (1, 4H)        f32
        "w_fc_row": w_fc_t.T,           # (1, H)         f32
        "b_fc": b_fc,                   # (1, 1)         f32
        # module-faithful f32 reference params (PyTorch i|f|g|o order)
        "embedding": emb,
        "w_ih_t": w_ih_t,
        "w_hh_t": w_hh_t,
        "b": (b_ih + b_hh).reshape(1, 4 * H),
        "w_fc_t": w_fc_t,
    }


def reference_forward(x_ids, p):
    """Pure-JAX f32 reference of the same forward pass (unpadded params)."""
    emb = p["embedding"][x_ids]                  # (B, T, E)
    B = x_ids.shape[0]
    H = p["w_hh_t"].shape[0]

    def step(carry, x_t):
        h, c = carry
        gates = x_t @ p["w_ih_t"] + h @ p["w_hh_t"] + p["b"]
        i, f, g, o = jnp.split(gates, 4, axis=-1)
        c = jax.nn.sigmoid(f) * c + jax.nn.sigmoid(i) * jnp.tanh(g)
        h = jax.nn.sigmoid(o) * jnp.tanh(c)
        return (h, c), None

    init = (jnp.zeros((B, H), jnp.float32), jnp.zeros((B, H), jnp.float32))
    (h_last, _), _ = jax.lax.scan(step, init, jnp.transpose(emb, (1, 0, 2)))
    return h_last @ p["w_fc_t"] + p["b_fc"]


if __name__ == "__main__":
    # Small, deterministic setup consistent with the module:
    # embedding_dim=100, hidden_dim=128, output_dim=1; synthetic tiny vocab.
    vocab_size, embedding_dim, hidden_dim, output_dim = 50, 100, 128, 1
    batch, seq_len = 2, 8

    key = jax.random.PRNGKey(0)
    k_params, k_ids = jax.random.split(key)
    params = init_params(k_params, vocab_size, embedding_dim, hidden_dim, output_dim)
    x_ids = jax.random.randint(k_ids, (batch, seq_len), 0, vocab_size, jnp.int32)

    out = spam_detector_forward(x_ids, params)
    out = jax.block_until_ready(out)

    ref = reference_forward(x_ids, params)
    assert out.shape == (batch, output_dim)
    # bf16 matmul operands in the kernel vs f32 reference -> loosened tolerance.
    assert jnp.allclose(out, ref, atol=3e-2, rtol=3e-2), (out, ref)

    print("KERNEL_OK")
</pallas_src>

<mosaic_0001>
module attributes {stable_mosaic.version = 11 : i64} {
  func.func @spam_lstm_kernel(%arg0: i32, %arg1: memref<64x1xi32, #tpu.memory_space<vmem>>, %arg2: memref<128x128xbf16, #tpu.memory_space<vmem>>, %arg3: memref<128x512xbf16, #tpu.memory_space<vmem>>, %arg4: memref<128x512xbf16, #tpu.memory_space<vmem>>, %arg5: memref<1x512xf32, #tpu.memory_space<vmem>>, %arg6: memref<1x128xf32, #tpu.memory_space<vmem>>, %arg7: memref<1x1xf32, #tpu.memory_space<vmem>>, %arg8: memref<8x1xf32, #tpu.memory_space<vmem>>) attributes {dimension_semantics = [#tpu.dimension_semantics<parallel>], iteration_bounds = array<i64: 1>, scalar_prefetch = 0 : i64, scratch_operands = 0 : i64, tpu.core_type = #tpu.core_type<tc>, window_params = [{transform_indices = @transform_0, window_bounds = array<i64: 64, 1>}, {pipeline_mode = #tpu.pipeline_mode<synchronous>, transform_indices = @transform_1, window_bounds = array<i64: 128, 128>}, {pipeline_mode = #tpu.pipeline_mode<synchronous>, transform_indices = @transform_2, window_bounds = array<i64: 128, 512>}, {pipeline_mode = #tpu.pipeline_mode<synchronous>, transform_indices = @transform_3, window_bounds = array<i64: 128, 512>}, {pipeline_mode = #tpu.pipeline_mode<synchronous>, transform_indices = @transform_4, window_bounds = array<i64: 1, 512>}, {pipeline_mode = #tpu.pipeline_mode<synchronous>, transform_indices = @transform_5, window_bounds = array<i64: 1, 128>}, {pipeline_mode = #tpu.pipeline_mode<synchronous>, transform_indices = @transform_6, window_bounds = array<i64: 1, 1>}, {transform_indices = @transform_7, window_bounds = array<i64: 8, 1>}]} {
    %c0 = arith.constant 0 : index
    %c0_0 = arith.constant 0 : index
    %0 = vector.load %arg1[%c0, %c0_0] : memref<64x1xi32, #tpu.memory_space<vmem>>, vector<64x1xi32>
    %1 = tpu.iota {dimensions = array<i32: 1>} : vector<64x128xi32>
    %2 = vector.broadcast %0 : vector<64x1xi32> to vector<64x128xi32>
    %3 = arith.cmpi eq, %2, %1 : vector<64x128xi32>
    %4 = arith.extui %3 : vector<64x128xi1> to vector<64x128xi32>
    %5 = arith.sitofp %4 : vector<64x128xi32> to vector<64x128xf32>
    %6 = arith.truncf %5 : vector<64x128xf32> to vector<64x128xbf16>
    %c0_1 = arith.constant 0 : index
    %c0_2 = arith.constant 0 : index
    %7 = vector.load %arg2[%c0_1, %c0_2] : memref<128x128xbf16, #tpu.memory_space<vmem>>, vector<128x128xbf16>
    %cst = arith.constant dense<0.000000e+00> : vector<64x128xf32>
    %8 = tpu.matmul %6, %7, %cst {dimension_numbers = #tpu.dot_dimension_numbers<[1], [0], [0], [1], [0, 0, 1, 1], [], []>} : vector<64x128xbf16>, vector<128x128xbf16>, vector<64x128xf32> -> vector<64x128xf32>
    %9 = arith.truncf %8 : vector<64x128xf32> to vector<64x128xbf16>
    %c0_3 = arith.constant 0 : index
    %c0_4 = arith.constant 0 : index
    %10 = vector.load %arg3[%c0_3, %c0_4] : memref<128x512xbf16, #tpu.memory_space<vmem>>, vector<128x512xbf16>
    %cst_5 = arith.constant dense<0.000000e+00> : vector<64x512xf32>
    %11 = tpu.matmul %9, %10, %cst_5 {dimension_numbers = #tpu.dot_dimension_numbers<[1], [0], [0], [1], [0, 0, 1, 1], [], []>} : vector<64x128xbf16>, vector<128x512xbf16>, vector<64x512xf32> -> vector<64x512xf32>
    %c0_6 = arith.constant 0 : index
    %c0_7 = arith.constant 0 : index
    %12 = vector.load %arg5[%c0_6, %c0_7] : memref<1x512xf32, #tpu.memory_space<vmem>>, vector<1x512xf32>
    %13 = vector.broadcast %12 : vector<1x512xf32> to vector<64x512xf32>
    %14 = arith.addf %11, %13 : vector<64x512xf32>
    %cst_8 = arith.constant 0.000000e+00 : f32
    %15 = vector.broadcast %cst_8 : f32 to vector<8x128xf32>
    %cst_9 = arith.constant 0.000000e+00 : f32
    %16 = vector.broadcast %cst_9 : f32 to vector<8x128xf32>
    %17 = vector.extract_strided_slice %14 {offsets = [0, 0], sizes = [8, 512], strides = [1, 1]} : vector<64x512xf32> to vector<8x512xf32>
    %18 = arith.truncf %15 : vector<8x128xf32> to vector<8x128xbf16>
    %c0_10 = arith.constant 0 : index
    %c0_11 = arith.constant 0 : index
    %19 = vector.load %arg4[%c0_10, %c0_11] : memref<128x512xbf16, #tpu.memory_space<vmem>>, vector<128x512xbf16>
    %cst_12 = arith.constant dense<0.000000e+00> : vector<8x512xf32>
    %20 = tpu.matmul %18, %19, %cst_12 {dimension_numbers = #tpu.dot_dimension_numbers<[1], [0], [0], [1], [0, 0, 1, 1], [], []>} : vector<8x128xbf16>, vector<128x512xbf16>, vector<8x512xf32> -> vector<8x512xf32>
    %21 = arith.addf %17, %20 : vector<8x512xf32>
    %22 = vector.extract_strided_slice %21 {offsets = [0, 0], sizes = [8, 384], strides = [1, 1]} : vector<8x512xf32> to vector<8x384xf32>
    %23 = arith.negf %22 : vector<8x384xf32>
    %24 = math.exp %23 : vector<8x384xf32>
    %cst_13 = arith.constant 1.000000e+00 : f32
    %25 = vector.broadcast %cst_13 : f32 to vector<8x384xf32>
    %26 = arith.addf %25, %24 : vector<8x384xf32>
    %27 = arith.divf %25, %26 : vector<8x384xf32>
    %28 = vector.extract_strided_slice %27 {offsets = [0, 0], sizes = [8, 128], strides = [1, 1]} : vector<8x384xf32> to vector<8x128xf32>
    %29 = vector.extract_strided_slice %27 {offsets = [0, 128], sizes = [8, 128], strides = [1, 1]} : vector<8x384xf32> to vector<8x128xf32>
    %30 = vector.extract_strided_slice %27 {offsets = [0, 256], sizes = [8, 128], strides = [1, 1]} : vector<8x384xf32> to vector<8x128xf32>
    %31 = vector.extract_strided_slice %21 {offsets = [0, 384], sizes = [8, 128], strides = [1, 1]} : vector<8x512xf32> to vector<8x128xf32>
    %32 = math.tanh %31 : vector<8x128xf32>
    %33 = arith.mulf %29, %16 : vector<8x128xf32>
    %34 = arith.mulf %28, %32 : vector<8x128xf32>
    %35 = arith.addf %33, %34 : vector<8x128xf32>
    %36 = math.tanh %35 : vector<8x128xf32>
    %37 = arith.mulf %30, %36 : vector<8x128xf32>
    %38 = vector.extract_strided_slice %14 {offsets = [8, 0], sizes = [8, 512], strides = [1, 1]} : vector<64x512xf32> to vector<8x512xf32>
    %39 = arith.truncf %37 : vector<8x128xf32> to vector<8x128xbf16>
    %c0_14 = arith.constant 0 : index
    %c0_15 = arith.constant 0 : index
    %40 = vector.load %arg4[%c0_14, %c0_15] : memref<128x512xbf16, #tpu.memory_space<vmem>>, vector<128x512xbf16>
    %cst_16 = arith.constant dense<0.000000e+00> : vector<8x512xf32>
    %41 = tpu.matmul %39, %40, %cst_16 {dimension_numbers = #tpu.dot_dimension_numbers<[1], [0], [0], [1], [0, 0, 1, 1], [], []>} : vector<8x128xbf16>, vector<128x512xbf16>, vector<8x512xf32> -> vector<8x512xf32>
    %42 = arith.addf %38, %41 : vector<8x512xf32>
    %43 = vector.extract_strided_slice %42 {offsets = [0, 0], sizes = [8, 384], strides = [1, 1]} : vector<8x512xf32> to vector<8x384xf32>
    %44 = arith.negf %43 : vector<8x384xf32>
    %45 = math.exp %44 : vector<8x384xf32>
    %cst_17 = arith.constant 1.000000e+00 : f32
    %46 = vector.broadcast %cst_17 : f32 to vector<8x384xf32>
    %47 = arith.addf %46, %45 : vector<8x384xf32>
    %48 = arith.divf %46, %47 : vector<8x384xf32>
    %49 = vector.extract_strided_slice %48 {offsets = [0, 0], sizes = [8, 128], strides = [1, 1]} : vector<8x384xf32> to vector<8x128xf32>
    %50 = vector.extract_strided_slice %48 {offsets = [0, 128], sizes = [8, 128], strides = [1, 1]} : vector<8x384xf32> to vector<8x128xf32>
    %51 = vector.extract_strided_slice %48 {offsets = [0, 256], sizes = [8, 128], strides = [1, 1]} : vector<8x384xf32> to vector<8x128xf32>
    %52 = vector.extract_strided_slice %42 {offsets = [0, 384], sizes = [8, 128], strides = [1, 1]} : vector<8x512xf32> to vector<8x128xf32>
    %53 = math.tanh %52 : vector<8x128xf32>
    %54 = arith.mulf %50, %35 : vector<8x128xf32>
    %55 = arith.mulf %49, %53 : vector<8x128xf32>
    %56 = arith.addf %54, %55 : vector<8x128xf32>
    %57 = math.tanh %56 : vector<8x128xf32>
    %58 = arith.mulf %51, %57 : vector<8x128xf32>
    %59 = vector.extract_strided_slice %14 {offsets = [16, 0], sizes = [8, 512], strides = [1, 1]} : vector<64x512xf32> to vector<8x512xf32>
    %60 = arith.truncf %58 : vector<8x128xf32> to vector<8x128xbf16>
    %c0_18 = arith.constant 0 : index
    %c0_19 = arith.constant 0 : index
    %61 = vector.load %arg4[%c0_18, %c0_19] : memref<128x512xbf16, #tpu.memory_space<vmem>>, vector<128x512xbf16>
    %cst_20 = arith.constant dense<0.000000e+00> : vector<8x512xf32>
    %62 = tpu.matmul %60, %61, %cst_20 {dimension_numbers = #tpu.dot_dimension_numbers<[1], [0], [0], [1], [0, 0, 1, 1], [], []>} : vector<8x128xbf16>, vector<128x512xbf16>, vector<8x512xf32> -> vector<8x512xf32>
    %63 = arith.addf %59, %62 : vector<8x512xf32>
    %64 = vector.extract_strided_slice %63 {offsets = [0, 0], sizes = [8, 384], strides = [1, 1]} : vector<8x512xf32> to vector<8x384xf32>
    %65 = arith.negf %64 : vector<8x384xf32>
    %66 = math.exp %65 : vector<8x384xf32>
    %cst_21 = arith.constant 1.000000e+00 : f32
    %67 = vector.broadcast %cst_21 : f32 to vector<8x384xf32>
    %68 = arith.addf %67, %66 : vector<8x384xf32>
    %69 = arith.divf %67, %68 : vector<8x384xf32>
    %70 = vector.extract_strided_slice %69 {offsets = [0, 0], sizes = [8, 128], strides = [1, 1]} : vector<8x384xf32> to vector<8x128xf32>
    %71 = vector.extract_strided_slice %69 {offsets = [0, 128], sizes = [8, 128], strides = [1, 1]} : vector<8x384xf32> to vector<8x128xf32>
    %72 = vector.extract_strided_slice %69 {offsets = [0, 256], sizes = [8, 128], strides = [1, 1]} : vector<8x384xf32> to vector<8x128xf32>
    %73 = vector.extract_strided_slice %63 {offsets = [0, 384], sizes = [8, 128], strides = [1, 1]} : vector<8x512xf32> to vector<8x128xf32>
    %74 = math.tanh %73 : vector<8x128xf32>
    %75 = arith.mulf %71, %56 : vector<8x128xf32>
    %76 = arith.mulf %70, %74 : vector<8x128xf32>
    %77 = arith.addf %75, %76 : vector<8x128xf32>
    %78 = math.tanh %77 : vector<8x128xf32>
    %79 = arith.mulf %72, %78 : vector<8x128xf32>
    %80 = vector.extract_strided_slice %14 {offsets = [24, 0], sizes = [8, 512], strides = [1, 1]} : vector<64x512xf32> to vector<8x512xf32>
    %81 = arith.truncf %79 : vector<8x128xf32> to vector<8x128xbf16>
    %c0_22 = arith.constant 0 : index
    %c0_23 = arith.constant 0 : index
    %82 = vector.load %arg4[%c0_22, %c0_23] : memref<128x512xbf16, #tpu.memory_space<vmem>>, vector<128x512xbf16>
    %cst_24 = arith.constant dense<0.000000e+00> : vector<8x512xf32>
    %83 = tpu.matmul %81, %82, %cst_24 {dimension_numbers = #tpu.dot_dimension_numbers<[1], [0], [0], [1], [0, 0, 1, 1], [], []>} : vector<8x128xbf16>, vector<128x512xbf16>, vector<8x512xf32> -> vector<8x512xf32>
    %84 = arith.addf %80, %83 : vector<8x512xf32>
    %85 = vector.extract_strided_slice %84 {offsets = [0, 0], sizes = [8, 384], strides = [1, 1]} : vector<8x512xf32> to vector<8x384xf32>
    %86 = arith.negf %85 : vector<8x384xf32>
    %87 = math.exp %86 : vector<8x384xf32>
    %cst_25 = arith.constant 1.000000e+00 : f32
    %88 = vector.broadcast %cst_25 : f32 to vector<8x384xf32>
    %89 = arith.addf %88, %87 : vector<8x384xf32>
    %90 = arith.divf %88, %89 : vector<8x384xf32>
    %91 = vector.extract_strided_slice %90 {offsets = [0, 0], sizes = [8, 128], strides = [1, 1]} : vector<8x384xf32> to vector<8x128xf32>
    %92 = vector.extract_strided_slice %90 {offsets = [0, 128], sizes = [8, 128], strides = [1, 1]} : vector<8x384xf32> to vector<8x128xf32>
    %93 = vector.extract_strided_slice %90 {offsets = [0, 256], sizes = [8, 128], strides = [1, 1]} : vector<8x384xf32> to vector<8x128xf32>
    %94 = vector.extract_strided_slice %84 {offsets = [0, 384], sizes = [8, 128], strides = [1, 1]} : vector<8x512xf32> to vector<8x128xf32>
    %95 = math.tanh %94 : vector<8x128xf32>
    %96 = arith.mulf %92, %77 : vector<8x128xf32>
    %97 = arith.mulf %91, %95 : vector<8x128xf32>
    %98 = arith.addf %96, %97 : vector<8x128xf32>
    %99 = math.tanh %98 : vector<8x128xf32>
    %100 = arith.mulf %93, %99 : vector<8x128xf32>
    %101 = vector.extract_strided_slice %14 {offsets = [32, 0], sizes = [8, 512], strides = [1, 1]} : vector<64x512xf32> to vector<8x512xf32>
    %102 = arith.truncf %100 : vector<8x128xf32> to vector<8x128xbf16>
    %c0_26 = arith.constant 0 : index
    %c0_27 = arith.constant 0 : index
    %103 = vector.load %arg4[%c0_26, %c0_27] : memref<128x512xbf16, #tpu.memory_space<vmem>>, vector<128x512xbf16>
    %cst_28 = arith.constant dense<0.000000e+00> : vector<8x512xf32>
    %104 = tpu.matmul %102, %103, %cst_28 {dimension_numbers = #tpu.dot_dimension_numbers<[1], [0], [0], [1], [0, 0, 1, 1], [], []>} : vector<8x128xbf16>, vector<128x512xbf16>, vector<8x512xf32> -> vector<8x512xf32>
    %105 = arith.addf %101, %104 : vector<8x512xf32>
    %106 = vector.extract_strided_slice %105 {offsets = [0, 0], sizes = [8, 384], strides = [1, 1]} : vector<8x512xf32> to vector<8x384xf32>
    %107 = arith.negf %106 : vector<8x384xf32>
    %108 = math.exp %107 : vector<8x384xf32>
    %cst_29 = arith.constant 1.000000e+00 : f32
    %109 = vector.broadcast %cst_29 : f32 to vector<8x384xf32>
    %110 = arith.addf %109, %108 : vector<8x384xf32>
    %111 = arith.divf %109, %110 : vector<8x384xf32>
    %112 = vector.extract_strided_slice %111 {offsets = [0, 0], sizes = [8, 128], strides = [1, 1]} : vector<8x384xf32> to vector<8x128xf32>
    %113 = vector.extract_strided_slice %111 {offsets = [0, 128], sizes = [8, 128], strides = [1, 1]} : vector<8x384xf32> to vector<8x128xf32>
    %114 = vector.extract_strided_slice %111 {offsets = [0, 256], sizes = [8, 128], strides = [1, 1]} : vector<8x384xf32> to vector<8x128xf32>
    %115 = vector.extract_strided_slice %105 {offsets = [0, 384], sizes = [8, 128], strides = [1, 1]} : vector<8x512xf32> to vector<8x128xf32>
    %116 = math.tanh %115 : vector<8x128xf32>
    %117 = arith.mulf %113, %98 : vector<8x128xf32>
    %118 = arith.mulf %112, %116 : vector<8x128xf32>
    %119 = arith.addf %117, %118 : vector<8x128xf32>
    %120 = math.tanh %119 : vector<8x128xf32>
    %121 = arith.mulf %114, %120 : vector<8x128xf32>
    %122 = vector.extract_strided_slice %14 {offsets = [40, 0], sizes = [8, 512], strides = [1, 1]} : vector<64x512xf32> to vector<8x512xf32>
    %123 = arith.truncf %121 : vector<8x128xf32> to vector<8x128xbf16>
    %c0_30 = arith.constant 0 : index
    %c0_31 = arith.constant 0 : index
    %124 = vector.load %arg4[%c0_30, %c0_31] : memref<128x512xbf16, #tpu.memory_space<vmem>>, vector<128x512xbf16>
    %cst_32 = arith.constant dense<0.000000e+00> : vector<8x512xf32>
    %125 = tpu.matmul %123, %124, %cst_32 {dimension_numbers = #tpu.dot_dimension_numbers<[1], [0], [0], [1], [0, 0, 1, 1], [], []>} : vector<8x128xbf16>, vector<128x512xbf16>, vector<8x512xf32> -> vector<8x512xf32>
    %126 = arith.addf %122, %125 : vector<8x512xf32>
    %127 = vector.extract_strided_slice %126 {offsets = [0, 0], sizes = [8, 384], strides = [1, 1]} : vector<8x512xf32> to vector<8x384xf32>
    %128 = arith.negf %127 : vector<8x384xf32>
    %129 = math.exp %128 : vector<8x384xf32>
    %cst_33 = arith.constant 1.000000e+00 : f32
    %130 = vector.broadcast %cst_33 : f32 to vector<8x384xf32>
    %131 = arith.addf %130, %129 : vector<8x384xf32>
    %132 = arith.divf %130, %131 : vector<8x384xf32>
    %133 = vector.extract_strided_slice %132 {offsets = [0, 0], sizes = [8, 128], strides = [1, 1]} : vector<8x384xf32> to vector<8x128xf32>
    %134 = vector.extract_strided_slice %132 {offsets = [0, 128], sizes = [8, 128], strides = [1, 1]} : vector<8x384xf32> to vector<8x128xf32>
    %135 = vector.extract_strided_slice %132 {offsets = [0, 256], sizes = [8, 128], strides = [1, 1]} : vector<8x384xf32> to vector<8x128xf32>
    %136 = vector.extract_strided_slice %126 {offsets = [0, 384], sizes = [8, 128], strides = [1, 1]} : vector<8x512xf32> to vector<8x128xf32>
    %137 = math.tanh %136 : vector<8x128xf32>
    %138 = arith.mulf %134, %119 : vector<8x128xf32>
    %139 = arith.mulf %133, %137 : vector<8x128xf32>
    %140 = arith.addf %138, %139 : vector<8x128xf32>
    %141 = math.tanh %140 : vector<8x128xf32>
    %142 = arith.mulf %135, %141 : vector<8x128xf32>
    %143 = vector.extract_strided_slice %14 {offsets = [48, 0], sizes = [8, 512], strides = [1, 1]} : vector<64x512xf32> to vector<8x512xf32>
    %144 = arith.truncf %142 : vector<8x128xf32> to vector<8x128xbf16>
    %c0_34 = arith.constant 0 : index
    %c0_35 = arith.constant 0 : index
    %145 = vector.load %arg4[%c0_34, %c0_35] : memref<128x512xbf16, #tpu.memory_space<vmem>>, vector<128x512xbf16>
    %cst_36 = arith.constant dense<0.000000e+00> : vector<8x512xf32>
    %146 = tpu.matmul %144, %145, %cst_36 {dimension_numbers = #tpu.dot_dimension_numbers<[1], [0], [0], [1], [0, 0, 1, 1], [], []>} : vector<8x128xbf16>, vector<128x512xbf16>, vector<8x512xf32> -> vector<8x512xf32>
    %147 = arith.addf %143, %146 : vector<8x512xf32>
    %148 = vector.extract_strided_slice %147 {offsets = [0, 0], sizes = [8, 384], strides = [1, 1]} : vector<8x512xf32> to vector<8x384xf32>
    %149 = arith.negf %148 : vector<8x384xf32>
    %150 = math.exp %149 : vector<8x384xf32>
    %cst_37 = arith.constant 1.000000e+00 : f32
    %151 = vector.broadcast %cst_37 : f32 to vector<8x384xf32>
    %152 = arith.addf %151, %150 : vector<8x384xf32>
    %153 = arith.divf %151, %152 : vector<8x384xf32>
    %154 = vector.extract_strided_slice %153 {offsets = [0, 0], sizes = [8, 128], strides = [1, 1]} : vector<8x384xf32> to vector<8x128xf32>
    %155 = vector.extract_strided_slice %153 {offsets = [0, 128], sizes = [8, 128], strides = [1, 1]} : vector<8x384xf32> to vector<8x128xf32>
    %156 = vector.extract_strided_slice %153 {offsets = [0, 256], sizes = [8, 128], strides = [1, 1]} : vector<8x384xf32> to vector<8x128xf32>
    %157 = vector.extract_strided_slice %147 {offsets = [0, 384], sizes = [8, 128], strides = [1, 1]} : vector<8x512xf32> to vector<8x128xf32>
    %158 = math.tanh %157 : vector<8x128xf32>
    %159 = arith.mulf %155, %140 : vector<8x128xf32>
    %160 = arith.mulf %154, %158 : vector<8x128xf32>
    %161 = arith.addf %159, %160 : vector<8x128xf32>
    %162 = math.tanh %161 : vector<8x128xf32>
    %163 = arith.mulf %156, %162 : vector<8x128xf32>
    %164 = vector.extract_strided_slice %14 {offsets = [56, 0], sizes = [8, 512], strides = [1, 1]} : vector<64x512xf32> to vector<8x512xf32>
    %165 = arith.truncf %163 : vector<8x128xf32> to vector<8x128xbf16>
    %c0_38 = arith.constant 0 : index
    %c0_39 = arith.constant 0 : index
    %166 = vector.load %arg4[%c0_38, %c0_39] : memref<128x512xbf16, #tpu.memory_space<vmem>>, vector<128x512xbf16>
    %cst_40 = arith.constant dense<0.000000e+00> : vector<8x512xf32>
    %167 = tpu.matmul %165, %166, %cst_40 {dimension_numbers = #tpu.dot_dimension_numbers<[1], [0], [0], [1], [0, 0, 1, 1], [], []>} : vector<8x128xbf16>, vector<128x512xbf16>, vector<8x512xf32> -> vector<8x512xf32>
    %168 = arith.addf %164, %167 : vector<8x512xf32>
    %169 = vector.extract_strided_slice %168 {offsets = [0, 0], sizes = [8, 384], strides = [1, 1]} : vector<8x512xf32> to vector<8x384xf32>
    %170 = arith.negf %169 : vector<8x384xf32>
    %171 = math.exp %170 : vector<8x384xf32>
    %cst_41 = arith.constant 1.000000e+00 : f32
    %172 = vector.broadcast %cst_41 : f32 to vector<8x384xf32>
    %173 = arith.addf %172, %171 : vector<8x384xf32>
    %174 = arith.divf %172, %173 : vector<8x384xf32>
    %175 = vector.extract_strided_slice %174 {offsets = [0, 0], sizes = [8, 128], strides = [1, 1]} : vector<8x384xf32> to vector<8x128xf32>
    %176 = vector.extract_strided_slice %174 {offsets = [0, 128], sizes = [8, 128], strides = [1, 1]} : vector<8x384xf32> to vector<8x128xf32>
    %177 = vector.extract_strided_slice %174 {offsets = [0, 256], sizes = [8, 128], strides = [1, 1]} : vector<8x384xf32> to vector<8x128xf32>
    %178 = vector.extract_strided_slice %168 {offsets = [0, 384], sizes = [8, 128], strides = [1, 1]} : vector<8x512xf32> to vector<8x128xf32>
    %179 = math.tanh %178 : vector<8x128xf32>
    %180 = arith.mulf %176, %161 : vector<8x128xf32>
    %181 = arith.mulf %175, %179 : vector<8x128xf32>
    %182 = arith.addf %180, %181 : vector<8x128xf32>
    %183 = math.tanh %182 : vector<8x128xf32>
    %184 = arith.mulf %177, %183 : vector<8x128xf32>
    %c0_42 = arith.constant 0 : index
    %c0_43 = arith.constant 0 : index
    %185 = vector.load %arg6[%c0_42, %c0_43] : memref<1x128xf32, #tpu.memory_space<vmem>>, vector<1x128xf32>
    %186 = vector.broadcast %185 : vector<1x128xf32> to vector<8x128xf32>
    %187 = arith.mulf %184, %186 : vector<8x128xf32>
    %cst_44 = arith.constant dense<0.000000e+00> : vector<8xf32>
    %188 = vector.multi_reduction <add>, %187, %cst_44 [1] : vector<8x128xf32> to vector<8xf32>
    %189 = vector.shape_cast %188 : vector<8xf32> to vector<8x1xf32>
    %c0_45 = arith.constant 0 : index
    %c0_46 = arith.constant 0 : index
    %190 = vector.load %arg7[%c0_45, %c0_46] : memref<1x1xf32, #tpu.memory_space<vmem>>, vector<1x1xf32>
    %191 = vector.broadcast %190 : vector<1x1xf32> to vector<8x1xf32>
    %192 = arith.addf %189, %191 : vector<8x1xf32>
    %c0_47 = arith.constant 0 : index
    %c0_48 = arith.constant 0 : index
    %193 = vector.load %arg8[%c0_47, %c0_48] : memref<8x1xf32, #tpu.memory_space<vmem>>, vector<8x1xf32>
    tpu.vector_store %arg8[%c0_47, %c0_48], %192 {strides = array<i32>} : memref<8x1xf32, #tpu.memory_space<vmem>>, vector<8x1xf32>,
    return
  }
  func.func @transform_0(%arg0: i32) -> (i32, i32) {
    %c0_i32 = arith.constant 0 : i32
    %c0_i32_0 = arith.constant 0 : i32
    return %arg0, %c0_i32 : i32, i32
  }
  func.func @transform_1(%arg0: i32) -> (i32, i32) {
    %c0_i32 = arith.constant 0 : i32
    %c0_i32_0 = arith.constant 0 : i32
    %c0_i32_1 = arith.constant 0 : i32
    return %c0_i32, %c0_i32_0 : i32, i32
  }
  func.func @transform_2(%arg0: i32) -> (i32, i32) {
    %c0_i32 = arith.constant 0 : i32
    %c0_i32_0 = arith.constant 0 : i32
    %c0_i32_1 = arith.constant 0 : i32
    return %c0_i32, %c0_i32_0 : i32, i32
  }
  func.func @transform_3(%arg0: i32) -> (i32, i32) {
    %c0_i32 = arith.constant 0 : i32
    %c0_i32_0 = arith.constant 0 : i32
    %c0_i32_1 = arith.constant 0 : i32
    return %c0_i32, %c0_i32_0 : i32, i32
  }
  func.func @transform_4(%arg0: i32) -> (i32, i32) {
    %c0_i32 = arith.constant 0 : i32
    %c0_i32_0 = arith.constant 0 : i32
    %c0_i32_1 = arith.constant 0 : i32
    return %c0_i32, %c0_i32_0 : i32, i32
  }
  func.func @transform_5(%arg0: i32) -> (i32, i32) {
    %c0_i32 = arith.constant 0 : i32
    %c0_i32_0 = arith.constant 0 : i32
    %c0_i32_1 = arith.constant 0 : i32
    return %c0_i32, %c0_i32_0 : i32, i32
  }
  func.func @transform_6(%arg0: i32) -> (i32, i32) {
    %c0_i32 = arith.constant 0 : i32
    %c0_i32_0 = arith.constant 0 : i32
    %c0_i32_1 = arith.constant 0 : i32
    return %c0_i32, %c0_i32_0 : i32, i32
  }
  func.func @transform_7(%arg0: i32) -> (i32, i32) {
    %c0_i32 = arith.constant 0 : i32
    %c0_i32_0 = arith.constant 0 : i32
    return %arg0, %c0_i32 : i32, i32
  }
}

</mosaic_0001>

<bundles_post_ra>
// kernel: spam_detector_forward.1
= control target key start
LH: loop header
LB: loop body
LE: loop exit
PB: predicated region body
PF: predicated region fallthrough
CT: control target
= control target key end

     0   :  { %s2823_s0 = inlined_call_operand.vmem [shape: s32[64,1], index: 0, kind: input, shape index: {}]   ;;  %s2824_s1 = inlined_call_operand.vmem [shape: bf16[128,128], index: 1, kind: input, shape index: {}]   ;;  %s2825_s2 = inlined_call_operand.hbm [shape: bf16[128,512], index: 2, kind: input, shape index: {}]   ;;  %s2826_s3 = inlined_call_operand.hbm [shape: bf16[128,512], index: 3, kind: input, shape index: {}]   ;;  %s2827_s4 = inlined_call_operand.vmem [shape: f32[1,512], index: 4, kind: input, shape index: {}]   ;;  %s2828_s5 = inlined_call_operand.vmem [shape: f32[1,128], index: 5, kind: input, shape index: {}]   ;;  %s2829_s6 = inlined_call_operand.<no memory space> [shape: f32[1,1], index: 6, kind: input, shape index: {}]   ;;  %s2830_s7 = inlined_call_operand.vmem [shape: f32[8,1], index: 7, kind: output, shape index: {}]  }
   0x1   :  { %v12_v0 = vstv %s2829_s6 }
   0x2   :  { %13 = vst [vmem:[#allocation2] sm:$0x1] %v12_v0 }
   0x3   :  { %14 = vsyncpa [#allocation4], 0 }
   0x4   :  { %15 = vsyncpa [#allocation6], 0  ;;  %s2187_s26 = smov [#allocation3]   ;;  %s2139_s30 = scalar_lea.hbm %s2825_s2, 4096 }
   0x5   :  { %s25_s27 = sshll.u32 %s2187_s26, 4  ;;  %p2140_p0 = scmp.ne.s32.totalorder %s2825_s2, %s2139_s30  ;;  %s26_s27 = int_to_ptr.vmem [resolvable:$true] %s25_s27 }
   0x6   :  { %p2143_p1 = scmp.lt.u32.totalorder %s2139_s30, %s2825_s2 }
   0x8   :  { %p2145_p2 = pnand %p2143_p1, %p2140_p0 }
   0xa   :  { %2148 = shalt.err (!%p2145_p2)
}
   0xb   :  { %s2149_s6 = scalar_lea.vmem %s26_s27, 4096  ;;  %p2154_p4 = scmp.lt.s32.totalorder %s26_s27, %s26_s27 }
   0xc   :  { %p2150_p3 = scmp.ne.s32.totalorder %s26_s27, %s2149_s6  ;;  %p2155_p5 = scmp.lt.s32.totalorder %s2149_s6, %s2149_s6 }
   0xe   :  { %p2156_p6 = por %p2155_p5, %p2154_p4 }
  0x10   :  { %p2157_p7 = pnand %p2156_p6, %p2150_p3 }
  0x12   :  { %2160 = shalt.err (!%p2157_p7)
}
  0x13   :  { %s2188_s12 = smov 256   ;;  %s2189_s13 = smov 16  }
  0x14   :  { %31 = dma.hbm_to_vmem [thread:$0]  %s2825_s2, 4096, %s26_s27, [#allocation4], %s2188_s12, %s2188_s12, %s2189_s13  }
  0x15   :  { %s2190_s16 = smov [#allocation5]   ;;  %s2161_s20 = scalar_lea.hbm %s2826_s3, 4096 }
  0x16   :  { %s37_s17 = sshll.u32 %s2190_s16, 4  ;;  %p2162_p8 = scmp.ne.s32.totalorder %s2826_s3, %s2161_s20  ;;  %s38_s17 = int_to_ptr.vmem [resolvable:$true] %s37_s17 }
  0x17   :  { %p2165_p9 = scmp.lt.u32.totalorder %s2161_s20, %s2826_s3 }
  0x19   :  { %p2167_p10 = pnand %p2165_p9, %p2162_p8 }
  0x1b   :  { %2170 = shalt.err (!%p2167_p10)
}
  0x1c   :  { %s2171_s25 = scalar_lea.vmem %s38_s17, 4096  ;;  %p2176_p12 = scmp.lt.s32.totalorder %s38_s17, %s38_s17 }
  0x1d   :  { %p2172_p11 = scmp.ne.s32.totalorder %s38_s17, %s2171_s25  ;;  %p2177_p13 = scmp.lt.s32.totalorder %s2171_s25, %s2171_s25 }
  0x1f   :  { %p2178_p0 = por %p2177_p13, %p2176_p12 }
  0x21   :  { %p2179_p1 = pnand %p2178_p0, %p2172_p11 }
  0x23   :  { %2182 = shalt.err (!%p2179_p1)
}
  0x24   :  { %43 = dma.hbm_to_vmem [thread:$0]  %s2826_s3, 4096, %s38_s17, [#allocation6], %s2188_s12, %s2188_s12, %s2189_s13  }
  0x25   :  { %2183 = dma.done.wait [#allocation4], 4096  }
  0x26   :  { %2184 = vsyncadd [#allocation4], 4294963200 }
  0x27   :  { %2185 = dma.done.wait [#allocation6], 4096  }
  0x28   :  { %2186 = vsyncadd [#allocation6], 4294963200  ;;  %v2831_v1 = vmov 0   ;;  %v59_v2 = vld [vmem:[%s2823_s0 + $0x10] sm:$0xff]  ;;  %v57_v3 = vld [vmem:[%s2823_s0] sm:$0xff]  ;;  %v65_v33 = vlaneseq  ;;  %vm1709_vm12 = vcmask 7168  }
  0x29   :  { %1874 = vset.pattern.permute.xlu1 %v2831_v1  ;;  %1873 = vset.pattern.permute.xlu0 %v2831_v1  ;;  %v60_v4 = vld [vmem:[%s2823_s0 + $0x18] sm:$0xff]  ;;  %v58_v5 = vld [vmem:[%s2823_s0 + $0x8] sm:$0xff]  ;;  %v1875_v6 = vld [vmem:[%s2824_s1] sm:$0xff]   ;;  %v2192_v41 = vmov 1.0|1.0  }
  0x2a   :  { %498 = vmatprep.mubr.bf16.mxu1 %v2831_v1  ;;  %74 = vperm.xlu1 %1874, %v59_v2   ;;  %v1876_v7 = vld [vmem:[%s2824_s1 + $0x8] sm:$0xff]   ;;  %v61_v9 = vld [vmem:[%s2823_s0 + $0x20] sm:$0xff]  ;;  %v64_v10 = vld [vmem:[%s2823_s0 + $0x38] sm:$0xff]  ;;  %v66_v36 = vand.u32 127, %v65_v33 }
  0x2b   :  { %68 = vperm.xlu0 %1873, %v57_v3   ;;  %v62_v8 = vld [vmem:[%s2823_s0 + $0x28] sm:$0xff]  ;;  %1843 = vmatprep.subr.bf16.mxu0 %v1875_v6  ;;  %v1877_v11 = vld [vmem:[%s2824_s1 + $0x10] sm:$0xff]   ;;  %v1878_v13 = vld [vmem:[%s2824_s1 + $0x18] sm:$0xff]  }
  0x2c   :  { %1844 = vmatpush3.bf16.msra.mxu0 %v1875_v6  ;;  %v63_v12 = vld [vmem:[%s2823_s0 + $0x30] sm:$0xff]  ;;  %v1879_v14 = vld [vmem:[%s2824_s1 + $0x20] sm:$0xff]   ;;  %v1880_v18 = vld [vmem:[%s2824_s1 + $0x28] sm:$0xff]  }
  0x2d   :  { %1845 = vmatprep.subr.bf16.mxu0 %v1876_v7  ;;  %v1883_v15 = vld [vmem:[#allocation3 + $0x4] ss:$16 sps:$4 sm:$0xff]   ;;  %v1885_v16 = vld [vmem:[#allocation3] ss:$16 sps:$4 sm:$0xff]   ;;  %v1888_v27 = vld [vmem:[#allocation3 + $0xc] ss:$16 sps:$4 sm:$0xff]  }
  0x2e   :  { %77 = vperm.xlu1 %1874, %v60_v4   ;;  %v1889_v17 = vld [vmem:[#allocation3 + $0x24] ss:$16 sps:$4 sm:$0xff]   ;;  %466 = vmatprep.subr.bf16.mxu1 %v1883_v15  ;;  %v1891_v19 = vld [vmem:[#allocation3 + $0x20] ss:$16 sps:$4 sm:$0xff]   ;;  %v1886_v39 = vld [vmem:[#allocation3 + $0x8] ss:$16 sps:$4 sm:$0xff]  }
  0x2f   :  { %71 = vperm.xlu0 %1873, %v58_v5   ;;  %467 = vmatpush1.bf16.msra.mxu1 %v1885_v16  ;;  %v1895_v20 = vld [vmem:[#allocation3 + $0x44] ss:$16 sps:$4 sm:$0xff]   ;;  %v1897_v22 = vld [vmem:[#allocation3 + $0x40] ss:$16 sps:$4 sm:$0xff]   ;;  %v1894_v40 = vld [vmem:[#allocation3 + $0x2c] ss:$16 sps:$4 sm:$0xff]  }
  0x30   :  { %1846 = vmatpush3.bf16.msra.mxu0 %v1876_v7  ;;  %468 = vmatprep.subr.bf16.mxu1 %v1889_v17  ;;  %v1881_v21 = vld [vmem:[%s2824_s1 + $0x30] sm:$0xff]   ;;  %v1882_v24 = vld [vmem:[%s2824_s1 + $0x38] sm:$0xff]  }
  0x31   :  { %1847 = vmatprep.subr.bf16.mxu0 %v1877_v11  ;;  %v1901_v23 = vld [vmem:[#allocation3 + $0x64] ss:$16 sps:$4 sm:$0xff]   ;;  %v1903_v25 = vld [vmem:[#allocation3 + $0x60] ss:$16 sps:$4 sm:$0xff]   ;;  %v1892_v44 = vld [vmem:[#allocation3 + $0x28] ss:$16 sps:$4 sm:$0xff]  }
  0x32   :  { %83 = vperm.xlu1 %1874, %v62_v8   ;;  %v1907_v26 = vld [vmem:[#allocation3 + $0x84] ss:$16 sps:$4 sm:$0xff]   ;;  %v1909_v28 = vld [vmem:[#allocation3 + $0x80] ss:$16 sps:$4 sm:$0xff]   ;;  %v1900_v45 = vld [vmem:[#allocation3 + $0x4c] ss:$16 sps:$4 sm:$0xff]  }
  0x33   :  { %80 = vperm.xlu0 %1873, %v61_v9   ;;  %469 = vmatpush1.bf16.msra.mxu1 %v1891_v19  ;;  %v1913_v29 = vld [vmem:[#allocation3 + $0xa4] ss:$16 sps:$4 sm:$0xff]   ;;  %v1915_v30 = vld [vmem:[#allocation3 + $0xa0] ss:$16 sps:$4 sm:$0xff]   ;;  %v1898_v48 = vld [vmem:[#allocation3 + $0x48] ss:$16 sps:$4 sm:$0xff]  }
  0x34   :  { %1848 = vmatpush3.bf16.msra.mxu0 %v1877_v11  ;;  %470 = vmatprep.subr.bf16.mxu1 %v1895_v20  ;;  %v1919_v31 = vld [vmem:[#allocation3 + $0xc4] ss:$16 sps:$4 sm:$0xff]   ;;  %v1921_v32 = vld [vmem:[#allocation3 + $0xc0] ss:$16 sps:$4 sm:$0xff]   ;;  %v1906_v49 = vld [vmem:[#allocation3 + $0x6c] ss:$16 sps:$4 sm:$0xff]  }
  0x35   :  { %1849 = vmatprep.subr.bf16.mxu0 %v1878_v13  ;;  %v1904_v50 = vld [vmem:[#allocation3 + $0x68] ss:$16 sps:$4 sm:$0xff]   ;;  %v1912_v51 = vld [vmem:[#allocation3 + $0x8c] ss:$16 sps:$4 sm:$0xff]   ;;  %v1925_v57 = vld [vmem:[#allocation3 + $0xe4] ss:$16 sps:$4 sm:$0xff]  }
  0x36   :  { %89 = vperm.xlu1 %1874, %v64_v10   ;;  %v1910_v52 = vld [vmem:[#allocation3 + $0x88] ss:$16 sps:$4 sm:$0xff]   ;;  %v1918_v53 = vld [vmem:[#allocation3 + $0xac] ss:$16 sps:$4 sm:$0xff]   ;;  %v1927_v59 = vld [vmem:[#allocation3 + $0xe0] ss:$16 sps:$4 sm:$0xff]  }
  0x37   :  { %86 = vperm.xlu0 %1873, %v63_v12   ;;  %471 = vmatpush1.bf16.msra.mxu1 %v1897_v22  ;;  %v1916_v54 = vld [vmem:[#allocation3 + $0xa8] ss:$16 sps:$4 sm:$0xff]   ;;  %v1924_v55 = vld [vmem:[#allocation3 + $0xcc] ss:$16 sps:$4 sm:$0xff]   ;;  %v2313_v61 = vld [vmem:[#allocation5 + $0x4] ss:$16 sps:$4 sm:$0xff]  }
  0x38   :  { %1850 = vmatpush3.bf16.msra.mxu0 %v1878_v13  ;;  %472 = vmatprep.subr.bf16.mxu1 %v1901_v23  ;;  %v1922_v56 = vld [vmem:[#allocation3 + $0xc8] ss:$16 sps:$4 sm:$0xff]   ;;  %v1930_v58 = vld [vmem:[#allocation3 + $0xec] ss:$16 sps:$4 sm:$0xff]   ;;  %v2319_v5 = vld [vmem:[#allocation5] ss:$16 sps:$4 sm:$0xff]  }
  0x39   :  { %1851 = vmatprep.subr.bf16.mxu0 %v1879_v14  ;;  %v1928_v60 = vld [vmem:[#allocation3 + $0xe8] ss:$16 sps:$4 sm:$0xff]   ;;  %v2315_v62 = vld [vmem:[#allocation5 + $0xc] ss:$16 sps:$4 sm:$0xff]   ;;  %v2323_v8 = vld [vmem:[#allocation5 + $0x24] ss:$16 sps:$4 sm:$0xff]  }
  0x3a   :  { %v2321_v6 = vld [vmem:[#allocation5 + $0x8] ss:$16 sps:$4 sm:$0xff]   ;;  %v2325_v9 = vld [vmem:[#allocation5 + $0x2c] ss:$16 sps:$4 sm:$0xff]   ;;  %v2329_v10 = vld [vmem:[#allocation5 + $0x20] ss:$16 sps:$4 sm:$0xff]  }
  0x3b   :  { %473 = vmatpush1.bf16.msra.mxu1 %v1903_v25  ;;  %v2331_v11 = vld [vmem:[#allocation5 + $0x28] ss:$16 sps:$4 sm:$0xff]   ;;  %v2335_v13 = vld [vmem:[#allocation5 + $0x44] ss:$16 sps:$4 sm:$0xff]   ;;  %v2343_v19 = vld [vmem:[#allocation5 + $0x40] ss:$16 sps:$4 sm:$0xff]  }
  0x3c   :  { %1852 = vmatpush3.bf16.msra.mxu0 %v1879_v14  ;;  %474 = vmatprep.subr.bf16.mxu1 %v1907_v26  ;;  %v2337_v14 = vld [vmem:[#allocation5 + $0x4c] ss:$16 sps:$4 sm:$0xff]   ;;  %v2345_v20 = vld [vmem:[#allocation5 + $0x48] ss:$16 sps:$4 sm:$0xff]   ;;  %v2349_v22 = vld [vmem:[#allocation5 + $0x64] ss:$16 sps:$4 sm:$0xff]  }
  0x3d   :  { %1853 = vmatprep.subr.bf16.mxu0 %v1880_v18  ;;  %v2351_v23 = vld [vmem:[#allocation5 + $0x6c] ss:$16 sps:$4 sm:$0xff]   ;;  %v2357_v25 = vld [vmem:[#allocation5 + $0x68] ss:$16 sps:$4 sm:$0xff]   ;;  %v2361_v26 = vld [vmem:[#allocation5 + $0x84] ss:$16 sps:$4 sm:$0xff]  }
  0x3f   :  { %475 = vmatpush1.bf16.msra.mxu1 %v1909_v28  ;;  %v2369_v28 = vld [vmem:[#allocation5 + $0x80] ss:$16 sps:$4 sm:$0xff]  }
  0x40   :  { %1854 = vmatpush3.bf16.msra.mxu0 %v1880_v18  ;;  %476 = vmatprep.subr.bf16.mxu1 %v1913_v29  ;;  %v2371_v29 = vld [vmem:[#allocation5 + $0x88] ss:$16 sps:$4 sm:$0xff]  }
  0x41   :  { %1855 = vmatprep.subr.bf16.mxu0 %v1881_v21 }
  0x43   :  { %477 = vmatpush1.bf16.msra.mxu1 %v1915_v30  ;;  %v2375_v30 = vld [vmem:[#allocation5 + $0xa4] ss:$16 sps:$4 sm:$0xff]  }
  0x44   :  { %1856 = vmatpush3.bf16.msra.mxu0 %v1881_v21  ;;  %478 = vmatprep.subr.bf16.mxu1 %v1919_v31  ;;  %v2377_v31 = vld [vmem:[#allocation5 + $0xac] ss:$16 sps:$4 sm:$0xff]  }
  0x45   :  { %1857 = vmatprep.subr.bf16.mxu0 %v1882_v24 }
  0x47   :  { %479 = vmatpush1.bf16.msra.mxu1 %v1921_v32  ;;  %v2381_v32 = vld [vmem:[#allocation5 + $0xa0] ss:$16 sps:$4 sm:$0xff]  }
  0x48   :  { %1858 = vmatpush3.bf16.msra.mxu0 %v1882_v24  ;;  %480 = vmatprep.subr.bf16.mxu1 %v1925_v57  ;;  %v2355_v24 = vld [vmem:[#allocation5 + $0x60] ss:$16 sps:$4 sm:$0xff]  }
  0x49   :  { %539 = vmatprep.subr.bf16.mxu0 %v1888_v27  ;;  %v2363_v27 = vld [vmem:[#allocation5 + $0x8c] ss:$16 sps:$4 sm:$0xff]  }
  0x4b   :  { %481 = vmatpush1.bf16.msra.mxu1 %v1927_v59 }
  0x4c   :  { %804 = vmatprep.subr.bf16.mxu1 %v2313_v61 }
  0xa9   :  { %v75_v34 = vpop.permute.xlu1 %74 }
  0xaa   :  { %v69_v35 = vpop.permute.xlu0 %68  ;;  %vm93_vm0 = vcmp.eq.s32.totalorder %v75_v34, %v66_v36  ;;  %v2383_v34 = vld [vmem:[#allocation5 + $0xa8] ss:$16 sps:$4 sm:$0xff]  }
  0xab   :  { %vm91_vm3 = vcmp.eq.s32.totalorder %v69_v35, %v66_v36  ;;  %v2387_v35 = vld [vmem:[#allocation5 + $0xc4] ss:$16 sps:$4 sm:$0xff]  }
  0xad   :  { %v78_v37 = vpop.permute.xlu1 %77 }
  0xae   :  { %v72_v38 = vpop.permute.xlu0 %71  ;;  %vm94_vm1 = vcmp.eq.s32.totalorder %v78_v37, %v66_v36  ;;  %v2395_v37 = vld [vmem:[#allocation5 + $0xc0] ss:$16 sps:$4 sm:$0xff]  }
  0xaf   :  { %vm92_vm2 = vcmp.eq.s32.totalorder %v72_v38, %v66_v36  ;;  %vm1735_vm4 = vmpackc.low %vm94_vm1, %vm93_vm0  ;;  %v2397_v38 = vld [vmem:[#allocation5 + $0xc8] ss:$16 sps:$4 sm:$0xff]  }
  0xb0   :  { %vm1733_vm5 = vmpackc.low %vm92_vm2, %vm91_vm3 }
  0xb1   :  { %1859 = vmatprep.mubr.msk.bf16.mxu0 %vm1733_vm5, %v2192_v41  ;;  %v84_v42 = vpop.permute.xlu1 %83 }
  0xb2   :  { %v81_v43 = vpop.permute.xlu0 %80  ;;  %vm96_vm6 = vcmp.eq.s32.totalorder %v84_v42, %v66_v36  ;;  %1860 = vmatmul.mubr.msk.bf16.vlgmr.msra.gmra.mrb[0].mxu0 %vm1735_vm4, %v2192_v41  ;;  %v2409_v42 = vld [vmem:[#allocation5 + $0xe8] ss:$16 sps:$4 sm:$0xff]  }
  0xb3   :  { %vm95_vm7 = vcmp.eq.s32.totalorder %v81_v43, %v66_v36  ;;  %540 = vmatpush1.bf16.msra.mxu0 %v1886_v39  ;;  %v2401_v39 = vld [vmem:[#allocation5 + $0xe4] ss:$16 sps:$4 sm:$0xff]   ;;  %v287_v43 = vshrl.u32 %v65_v33, 7 }
  0xb4   :  { %vm1737_vm8 = vmpackc.low %vm96_vm6, %vm95_vm7  ;;  %541 = vmatprep.subr.bf16.mxu0 %v1894_v40  ;;  %v2403_v40 = vld [vmem:[#allocation5 + $0xec] ss:$16 sps:$4 sm:$0xff]  }
  0xb5   :  { %1863 = vmatprep.mubr.msk.bf16.mxu0 %vm1737_vm8, %v2192_v41  ;;  %v90_v46 = vpop.permute.xlu1 %89 }
  0xb6   :  { %v87_v47 = vpop.permute.xlu0 %86  ;;  %vm98_vm9 = vcmp.eq.s32.totalorder %v90_v46, %v66_v36  ;;  %v284_v46 = vld [vmem:[%s2827_s4] sm:$0xf] }
  0xb7   :  { %vm97_vm10 = vcmp.eq.s32.totalorder %v87_v47, %v66_v36  ;;  %542 = vmatpush1.bf16.msra.mxu0 %v1892_v44  ;;  %v2389_v36 = vld [vmem:[#allocation5 + $0xcc] ss:$16 sps:$4 sm:$0xff]   ;;  %v288_v44 = vsub.s32 0, %v287_v43  ;;  %v292_v47 = vsub.s32 1, %v287_v43 }
  0xb8   :  { %vm1739_vm11 = vmpackc.low %vm98_vm9, %vm97_vm10  ;;  %543 = vmatprep.subr.bf16.mxu0 %v1900_v45  ;;  %v296_v45 = vsub.s32 2, %v287_v43 }
  0xba   :  { %1864 = vmatmul.mubr.msk.bf16.gmra.mrb[4].mxu0 %vm1739_vm11, %v2192_v41  ;;  %v2407_v41 = vld [vmem:[#allocation5 + $0xe0] ss:$16 sps:$4 sm:$0xff]  }
  0xbb   :  { %544 = vmatpush1.bf16.msra.mxu0 %v1898_v48  ;;  %571 = vmatprep.mubr.bf16.mxu0 %v2831_v1  ;;  %v300_v48 = vsub.s32 3, %v287_v43 }
  0xbc   :  { %545 = vmatprep.subr.bf16.mxu0 %v1906_v49  ;;  %v289_v49 = vrot.slane %v284_v46, %v288_v44 }
  0xbf   :  { %546 = vmatpush1.bf16.msra.mxu0 %v1904_v50  ;;  %v297_v50 = vrot.slane %v284_v46, %v296_v45 }
  0xc0   :  { %547 = vmatprep.subr.bf16.mxu0 %v1912_v51  ;;  %v2459_v51 = vrot.slane %v284_v46, %v292_v47 }
  0xc3   :  { %548 = vmatpush1.bf16.msra.mxu0 %v1910_v52  ;;  %v2461_v52 = vrot.slane %v284_v46, %v300_v48 }
  0xc4   :  { %549 = vmatprep.subr.bf16.mxu0 %v1918_v53 }
  0xc7   :  { %550 = vmatpush1.bf16.msra.mxu0 %v1916_v54 }
  0xc8   :  { %551 = vmatprep.subr.bf16.mxu0 %v1924_v55 }
  0xcb   :  { %552 = vmatpush1.bf16.msra.mxu0 %v1922_v56 }
  0xcc   :  { %553 = vmatprep.subr.bf16.mxu0 %v1930_v58 }
  0xcf   :  { %554 = vmatpush1.bf16.msra.mxu0 %v1928_v60 }
  0xd0   :  { %845 = vmatprep.subr.bf16.mxu0 %v2315_v62 }
 0x185   :  { %v1861_v63 = vpop.f32.mrb[0].mxu0 }
 0x186   :  { %v217_v0 = vpop.f32.mrb[1].mxu0 }
 0x187   :  { %v1862_v2 = vpop.f32.mrb[2].mxu0 }
 0x188   :  { %v249_v3 = vpack.c.bf16 %v1862_v2, %v1861_v63  ;;  %v220_v4 = vpop.f32.mrb[3].mxu0 }
 0x189   :  { %v248_v7 = vpack.c.bf16 %v220_v4, %v217_v0 }
 0x18b   :  { %499 = vmatmul.mubr.bf16.vlgmr.msra.gmra.mrb[0].mxu1 %v248_v7  ;;  %572 = vmatmul.mubr.bf16.vlgmr.msra.gmra.mrb[8].mxu0 %v248_v7 }
 0x18c   :  { %805 = vmatpush1.bf16.msra.mxu1 %v2319_v5  ;;  %846 = vmatpush1.bf16.msra.mxu0 %v2321_v6 }
 0x18d   :  { %v1865_v12 = vpop.f32.mrb[4].mxu0  ;;  %806 = vmatprep.subr.bf16.mxu1 %v2323_v8  ;;  %847 = vmatprep.subr.bf16.mxu0 %v2325_v9 }
 0x18e   :  { %v233_v15 = vpop.f32.mrb[5].mxu0  ;;  %508 = vmatprep.mubr.bf16.mxu1 %v2831_v1  ;;  %581 = vmatprep.mubr.bf16.mxu0 %v2831_v1 }
 0x18f   :  { %v1866_v16 = vpop.f32.mrb[6].mxu0 }
 0x190   :  { %v251_v17 = vpack.c.bf16 %v1866_v16, %v1865_v12  ;;  %807 = vmatpush1.bf16.msra.mxu1 %v2329_v10  ;;  %v236_v18 = vpop.f32.mrb[7].mxu0  ;;  %848 = vmatpush1.bf16.msra.mxu0 %v2331_v11 }
 0x191   :  { %v250_v21 = vpack.c.bf16 %v236_v18, %v233_v15  ;;  %808 = vmatprep.subr.bf16.mxu1 %v2335_v13  ;;  %849 = vmatprep.subr.bf16.mxu0 %v2337_v14 }
 0x193   :  { %509 = vmatmul.mubr.bf16.gmra.mrb[4].mxu1 %v249_v3  ;;  %582 = vmatmul.mubr.bf16.gmra.mrb[12].mxu0 %v249_v3 }
 0x194   :  { %809 = vmatpush1.bf16.msra.mxu1 %v2343_v19  ;;  %850 = vmatpush1.bf16.msra.mxu0 %v2345_v20 }
 0x195   :  { %810 = vmatprep.subr.bf16.mxu1 %v2349_v22  ;;  %851 = vmatprep.subr.bf16.mxu0 %v2351_v23 }
 0x196   :  { %518 = vmatprep.mubr.bf16.mxu1 %v2831_v1  ;;  %591 = vmatprep.mubr.bf16.mxu0 %v2831_v1 }
 0x198   :  { %811 = vmatpush1.bf16.msra.mxu1 %v2355_v24  ;;  %852 = vmatpush1.bf16.msra.mxu0 %v2357_v25 }
 0x199   :  { %812 = vmatprep.subr.bf16.mxu1 %v2361_v26  ;;  %853 = vmatprep.subr.bf16.mxu0 %v2363_v27 }
 0x19b   :  { %519 = vmatmul.mubr.bf16.gmra.mrb[8].mxu1 %v250_v21  ;;  %592 = vmatmul.mubr.bf16.gmra.mrb[16].mxu0 %v250_v21 }
 0x19c   :  { %813 = vmatpush1.bf16.msra.mxu1 %v2369_v28  ;;  %854 = vmatpush1.bf16.msra.mxu0 %v2371_v29 }
 0x19d   :  { %814 = vmatprep.subr.bf16.mxu1 %v2375_v30  ;;  %855 = vmatprep.subr.bf16.mxu0 %v2377_v31 }
 0x19e   :  { %528 = vmatprep.mubr.bf16.mxu1 %v2831_v1  ;;  %601 = vmatprep.mubr.bf16.mxu0 %v2831_v1 }
 0x1a0   :  { %815 = vmatpush1.bf16.msra.mxu1 %v2381_v32  ;;  %856 = vmatpush1.bf16.msra.mxu0 %v2383_v34 }
 0x1a1   :  { %816 = vmatprep.subr.bf16.mxu1 %v2387_v35  ;;  %857 = vmatprep.subr.bf16.mxu0 %v2389_v36 }
 0x1a3   :  { %529 = vmatmul.mubr.bf16.gmra.mrb[12].mxu1 %v251_v17  ;;  %602 = vmatmul.mubr.bf16.gmra.mrb[20].mxu0 %v251_v17 }
 0x1a4   :  { %817 = vmatpush1.bf16.msra.mxu1 %v2395_v37  ;;  %858 = vmatpush1.bf16.msra.mxu0 %v2397_v38 }
 0x1a5   :  { %818 = vmatprep.subr.bf16.mxu1 %v2401_v39  ;;  %859 = vmatprep.subr.bf16.mxu0 %v2403_v40 }
 0x1a6   :  { %836 = vmatprep.mubr.bf16.mxu1 %v2831_v1  ;;  %877 = vmatprep.mubr.bf16.mxu0 %v2831_v1 }
 0x1a8   :  { %819 = vmatpush1.bf16.msra.mxu1 %v2407_v41  ;;  %860 = vmatpush1.bf16.msra.mxu0 %v2409_v42 }
 0x1a9   :  { %915 = vmatprep.subr.bf16.mxu1 %v2313_v61  ;;  %956 = vmatprep.subr.bf16.mxu0 %v2315_v62 }
 0x1ab   :  { %837 = vmatmul.mubr.bf16.vlgmr.msra.gmra.mrb[16].mxu1 %v2831_v1  ;;  %878 = vmatmul.mubr.bf16.vlgmr.msra.gmra.mrb[24].mxu0 %v2831_v1 }
 0x1ac   :  { %916 = vmatpush1.bf16.msra.mxu1 %v2319_v5  ;;  %957 = vmatpush1.bf16.msra.mxu0 %v2321_v6 }
 0x1ad   :  { %917 = vmatprep.subr.bf16.mxu1 %v2323_v8  ;;  %958 = vmatprep.subr.bf16.mxu0 %v2325_v9 }
 0x1ae   :  { %947 = vmatprep.mubr.bf16.mxu1 %v2831_v1  ;;  %988 = vmatprep.mubr.bf16.mxu0 %v2831_v1 }
 0x1b0   :  { %918 = vmatpush1.bf16.msra.mxu1 %v2329_v10  ;;  %959 = vmatpush1.bf16.msra.mxu0 %v2331_v11 }
 0x1b1   :  { %919 = vmatprep.subr.bf16.mxu1 %v2335_v13  ;;  %960 = vmatprep.subr.bf16.mxu0 %v2337_v14 }
 0x1b4   :  { %920 = vmatpush1.bf16.msra.mxu1 %v2343_v19  ;;  %961 = vmatpush1.bf16.msra.mxu0 %v2345_v20 }
 0x1b5   :  { %921 = vmatprep.subr.bf16.mxu1 %v2349_v22  ;;  %962 = vmatprep.subr.bf16.mxu0 %v2351_v23 }
 0x1b8   :  { %922 = vmatpush1.bf16.msra.mxu1 %v2355_v24  ;;  %963 = vmatpush1.bf16.msra.mxu0 %v2357_v25 }
 0x1b9   :  { %923 = vmatprep.subr.bf16.mxu1 %v2361_v26  ;;  %964 = vmatprep.subr.bf16.mxu0 %v2363_v27 }
 0x1bc   :  { %924 = vmatpush1.bf16.msra.mxu1 %v2369_v28  ;;  %965 = vmatpush1.bf16.msra.mxu0 %v2371_v29 }
 0x1bd   :  { %925 = vmatprep.subr.bf16.mxu1 %v2375_v30  ;;  %966 = vmatprep.subr.bf16.mxu0 %v2377_v31 }
 0x1c0   :  { %926 = vmatpush1.bf16.msra.mxu1 %v2381_v32  ;;  %967 = vmatpush1.bf16.msra.mxu0 %v2383_v34 }
 0x1c1   :  { %927 = vmatprep.subr.bf16.mxu1 %v2387_v35  ;;  %968 = vmatprep.subr.bf16.mxu0 %v2389_v36 }
 0x1c4   :  { %928 = vmatpush1.bf16.msra.mxu1 %v2395_v37  ;;  %969 = vmatpush1.bf16.msra.mxu0 %v2397_v38 }
 0x1c5   :  { %929 = vmatprep.subr.bf16.mxu1 %v2401_v39  ;;  %970 = vmatprep.subr.bf16.mxu0 %v2403_v40 }
 0x1c8   :  { %930 = vmatpush1.bf16.msra.mxu1 %v2407_v41  ;;  %971 = vmatpush1.bf16.msra.mxu0 %v2409_v42 }
 0x1c9   :  { %1026 = vmatprep.subr.bf16.mxu1 %v2313_v61  ;;  %1067 = vmatprep.subr.bf16.mxu0 %v2315_v62 }
 0x25e   :  { %v500_v53 = vpop.f32.mrb[0].mxu1  ;;  %v573_v54 = vpop.f32.mrb[8].mxu0 }
 0x25f   :  { %v2463_v55 = vadd.f32 %v500_v53, %v289_v49  ;;  %v2465_v56 = vadd.f32 %v573_v54, %v297_v50  ;;  %v502_v33 = vpop.f32.mrb[1].mxu1  ;;  %v575_v57 = vpop.f32.mrb[9].mxu0 }
 0x260   :  { %v2468_v58 = vadd.f32 %v502_v33, %v2459_v51  ;;  %v2471_v59 = vadd.f32 %v575_v57, %v2461_v52  ;;  %v504_v60 = vpop.f32.mrb[2].mxu1  ;;  %v577_v63 = vpop.f32.mrb[10].mxu0 }
 0x261   :  { %v2473_v0 = vadd.f32 %v504_v60, %v289_v49  ;;  %v2475_v2 = vadd.f32 %v577_v63, %v297_v50  ;;  %v506_v3 = vpop.f32.mrb[3].mxu1  ;;  %v579_v4 = vpop.f32.mrb[11].mxu0 }
 0x262   :  { %v2478_v7 = vadd.f32 %v506_v3, %v2459_v51  ;;  %v2481_v12 = vadd.f32 %v579_v4, %v2461_v52 }
 0x266   :  { %v510_v15 = vpop.f32.mrb[4].mxu1  ;;  %v583_v16 = vpop.f32.mrb[12].mxu0 }
 0x267   :  { %v2483_v17 = vadd.f32 %v510_v15, %v289_v49  ;;  %v2485_v18 = vadd.f32 %v583_v16, %v297_v50  ;;  %v512_v21 = vpop.f32.mrb[5].mxu1  ;;  %v585_v43 = vpop.f32.mrb[13].mxu0 }
 0x268   :  { %v2488_v44 = vadd.f32 %v512_v21, %v2459_v51  ;;  %v2491_v45 = vadd.f32 %v585_v43, %v2461_v52  ;;  %v514_v46 = vpop.f32.mrb[6].mxu1  ;;  %v587_v47 = vpop.f32.mrb[14].mxu0 }
 0x269   :  { %v2493_v48 = vadd.f32 %v514_v46, %v289_v49  ;;  %v2495_v53 = vadd.f32 %v587_v47, %v297_v50  ;;  %v516_v54 = vpop.f32.mrb[7].mxu1  ;;  %v589_v33 = vpop.f32.mrb[15].mxu0 }
 0x26a   :  { %v2498_v57 = vadd.f32 %v516_v54, %v2459_v51  ;;  %v2501_v60 = vadd.f32 %v589_v33, %v2461_v52 }
 0x26c   :  { %2833 = vst [vmem:[#allocation9_spill] sm:$0xff] %v2498_v57  ;;  %2834 = vst [vmem:[#allocation10_spill] sm:$0xff] %v2501_v60 }
 0x26e   :  { %v520_v63 = vpop.f32.mrb[8].mxu1  ;;  %v593_v3 = vpop.f32.mrb[16].mxu0 }
 0x26f   :  { %v2503_v4 = vadd.f32 %v520_v63, %v289_v49  ;;  %v2505_v15 = vadd.f32 %v593_v3, %v297_v50  ;;  %v522_v16 = vpop.f32.mrb[9].mxu1  ;;  %v595_v21 = vpop.f32.mrb[17].mxu0 }
 0x270   :  { %v2508_v43 = vadd.f32 %v522_v16, %v2459_v51  ;;  %v2511_v46 = vadd.f32 %v595_v21, %v2461_v52  ;;  %v524_v47 = vpop.f32.mrb[10].mxu1  ;;  %v597_v54 = vpop.f32.mrb[18].mxu0 }
 0x271   :  { %2835 = vst [vmem:[#allocation11_spill] sm:$0xff] %v2503_v4  ;;  %2836 = vst [vmem:[#allocation12_spill] sm:$0xff] %v2505_v15  ;;  %v2513_v1 = vadd.f32 %v524_v47, %v289_v49  ;;  %v2515_v33 = vadd.f32 %v597_v54, %v297_v50  ;;  %v526_v60 = vpop.f32.mrb[11].mxu1  ;;  %v599_v57 = vpop.f32.mrb[19].mxu0 }
 0x272   :  { %2837 = vst [vmem:[#allocation13_spill] sm:$0xff] %v2508_v43  ;;  %2838 = vst [vmem:[#allocation14_spill] sm:$0xff] %v2511_v46  ;;  %v2518_v63 = vadd.f32 %v526_v60, %v2459_v51  ;;  %v2521_v3 = vadd.f32 %v599_v57, %v2461_v52 }
 0x273   :  { %2839 = vst [vmem:[#allocation15_spill] sm:$0xff] %v2513_v1  ;;  %2840 = vst [vmem:[#allocation16_spill] sm:$0xff] %v2515_v33 }
 0x274   :  { %2841 = vst [vmem:[#allocation17_spill] sm:$0xff] %v2518_v63  ;;  %2842 = vst [vmem:[#allocation18_spill] sm:$0xff] %v2521_v3 }
 0x276   :  { %v530_v15 = vpop.f32.mrb[12].mxu1  ;;  %v603_v16 = vpop.f32.mrb[20].mxu0 }
 0x277   :  { %v2523_v43 = vadd.f32 %v530_v15, %v289_v49  ;;  %v2525_v21 = vadd.f32 %v603_v16, %v297_v50  ;;  %v532_v46 = vpop.f32.mrb[13].mxu1  ;;  %v605_v4 = vpop.f32.mrb[21].mxu0 }
 0x278   :  { %v2528_v47 = vadd.f32 %v532_v46, %v2459_v51  ;;  %v2531_v54 = vadd.f32 %v605_v4, %v2461_v52  ;;  %v534_v33 = vpop.f32.mrb[14].mxu1  ;;  %v607_v60 = vpop.f32.mrb[22].mxu0 }
 0x279   :  { %2843 = vst [vmem:[#allocation19_spill] sm:$0xff] %v2523_v43  ;;  %2844 = vst [vmem:[#allocation20_spill] sm:$0xff] %v2525_v21  ;;  %v2533_v63 = vadd.f32 %v534_v33, %v289_v49  ;;  %v2535_v57 = vadd.f32 %v607_v60, %v297_v50  ;;  %v536_v3 = vpop.f32.mrb[15].mxu1  ;;  %v609_v1 = vpop.f32.mrb[23].mxu0 }
 0x27a   :  { %2845 = vst [vmem:[#allocation21_spill] sm:$0xff] %v2528_v47  ;;  %2846 = vst [vmem:[#allocation22_spill] sm:$0xff] %v2531_v54  ;;  %v2538_v15 = vadd.f32 %v536_v3, %v2459_v51  ;;  %v2541_v16 = vadd.f32 %v609_v1, %v2461_v52 }
 0x27b   :  { %2847 = vst [vmem:[#allocation23_spill] sm:$0xff] %v2535_v57 }
 0x27c   :  { %2848 = vst [vmem:[#allocation24_spill] sm:$0xff] %v2538_v15  ;;  %2849 = vst [vmem:[#allocation25_spill] sm:$0xff] %v2541_v16 }
 0x27e   :  { %v838_v21 = vpop.f32.mrb[16].mxu1  ;;  %v879_v46 = vpop.f32.mrb[24].mxu0 }
 0x27f   :  { %v886_v47 = vadd.f32 %v838_v21, %v2463_v55  ;;  %v888_v4 = vadd.f32 %v879_v46, %v2465_v56  ;;  %v840_v54 = vpop.f32.mrb[17].mxu1  ;;  %v881_v43 = vpop.f32.mrb[25].mxu0 }
 0x280   :  { %v887_v49 = vadd.f32 %v840_v54, %v2468_v58  ;;  %v889_v50 = vadd.f32 %v881_v43, %v2471_v59  ;;  %v842_v33 = vpop.f32.mrb[18].mxu1  ;;  %v883_v60 = vpop.f32.mrb[26].mxu0 }
 0x281   :  { %v1805_v57 = vmul.f32 -1.442695, %v886_v47  ;;  %v843_v51 = vpop.f32.mrb[19].mxu1  ;;  %v884_v3 = vpop.f32.mrb[27].mxu0  ;;  %v1807_v1 = vmul.f32 -1.442695, %v888_v4 }
 0x282   :  { %v1806_v15 = vmul.f32 -1.442695, %v887_v49 }
 0x283   :  { %1979 = vpow2.f32 %v1805_v57 }
 0x284   :  { %1981 = vpow2.f32 %v1806_v15 }
 0x285   :  { %1983 = vtanh.f32 %v889_v50 }
 0x286   :  { %1985 = vpow2.f32 %v1807_v1 }
 0x28d   :  { %v1980_v52 = vpop.eup %1979 }
 0x28e   :  { %v899_v16 = vadd.f32 1.0, %v1980_v52  ;;  %v1982_v55 = vpop.eup %1981 }
 0x28f   :  { %v900_v56 = vadd.f32 1.0, %v1982_v55  ;;  %v1984_v58 = vpop.eup %1983 }
 0x290   :  { %1987 = vrcp.f32 %v899_v16  ;;  %v1986_v21 = vpop.eup %1985  ;;  %v2850_v16 = vmov 0  }
 0x291   :  { %1989 = vrcp.f32 %v900_v56  ;;  %v901_v47 = vadd.f32 1.0, %v1986_v21 }
 0x293   :  { %1991 = vrcp.f32 %v901_v47 }
 0x29a   :  { %v1988_v59 = vpop.eup %1987 }
 0x29b   :  { %v910_v43 = vmul.f32 %v1988_v59, %v1984_v58  ;;  %v1990_v54 = vpop.eup %1989 }
 0x29c   :  { %v909_v46 = vmul.f32 0.0, %v1990_v54 }
 0x29d   :  { %v1992_v57 = vpop.eup %1991 }
 0x29e   :  { %v2547_v33 = vadd.f32 %v910_v43, %v909_v46 }
 0x2a0   :  { %1993 = vtanh.f32 %v2547_v33 }
 0x2aa   :  { %v1994_v15 = vpop.eup %1993 }
 0x2ab   :  { %v913_v4 = vmul.f32 %v1994_v15, %v1992_v57 }
 0x2ad   :  { %v914_v49 = vpack.c.bf16 %v913_v4, %v913_v4 }
 0x2af   :  { %948 = vmatmul.mubr.bf16.vlgmr.msra.gmra.mrb[20].mxu1 %v914_v49  ;;  %989 = vmatmul.mubr.bf16.vlgmr.msra.gmra.mrb[28].mxu0 %v914_v49 }
 0x2b0   :  { %1027 = vmatpush1.bf16.msra.mxu1 %v2319_v5  ;;  %1068 = vmatpush1.bf16.msra.mxu0 %v2321_v6 }
 0x2b1   :  { %1028 = vmatprep.subr.bf16.mxu1 %v2323_v8  ;;  %1069 = vmatprep.subr.bf16.mxu0 %v2325_v9 }
 0x2b2   :  { %1058 = vmatprep.mubr.bf16.mxu1 %v2850_v16  ;;  %1099 = vmatprep.mubr.bf16.mxu0 %v2850_v16 }
 0x2b4   :  { %1029 = vmatpush1.bf16.msra.mxu1 %v2329_v10  ;;  %1070 = vmatpush1.bf16.msra.mxu0 %v2331_v11 }
 0x2b5   :  { %1030 = vmatprep.subr.bf16.mxu1 %v2335_v13  ;;  %1071 = vmatprep.subr.bf16.mxu0 %v2337_v14 }
 0x2b8   :  { %1031 = vmatpush1.bf16.msra.mxu1 %v2343_v19  ;;  %1072 = vmatpush1.bf16.msra.mxu0 %v2345_v20 }
 0x2b9   :  { %1032 = vmatprep.subr.bf16.mxu1 %v2349_v22  ;;  %1073 = vmatprep.subr.bf16.mxu0 %v2351_v23 }
 0x2bc   :  { %1033 = vmatpush1.bf16.msra.mxu1 %v2355_v24  ;;  %1074 = vmatpush1.bf16.msra.mxu0 %v2357_v25 }
 0x2bd   :  { %1034 = vmatprep.subr.bf16.mxu1 %v2361_v26  ;;  %1075 = vmatprep.subr.bf16.mxu0 %v2363_v27 }
 0x2c0   :  { %1035 = vmatpush1.bf16.msra.mxu1 %v2369_v28  ;;  %1076 = vmatpush1.bf16.msra.mxu0 %v2371_v29 }
 0x2c1   :  { %1036 = vmatprep.subr.bf16.mxu1 %v2375_v30  ;;  %1077 = vmatprep.subr.bf16.mxu0 %v2377_v31 }
 0x2c4   :  { %1037 = vmatpush1.bf16.msra.mxu1 %v2381_v32  ;;  %1078 = vmatpush1.bf16.msra.mxu0 %v2383_v34 }
 0x2c5   :  { %1038 = vmatprep.subr.bf16.mxu1 %v2387_v35  ;;  %1079 = vmatprep.subr.bf16.mxu0 %v2389_v36 }
 0x2c8   :  { %1039 = vmatpush1.bf16.msra.mxu1 %v2395_v37  ;;  %1080 = vmatpush1.bf16.msra.mxu0 %v2397_v38 }
 0x2c9   :  { %1040 = vmatprep.subr.bf16.mxu1 %v2401_v39  ;;  %1081 = vmatprep.subr.bf16.mxu0 %v2403_v40 }
 0x2cc   :  { %1041 = vmatpush1.bf16.msra.mxu1 %v2407_v41  ;;  %1082 = vmatpush1.bf16.msra.mxu0 %v2409_v42 }
 0x2cd   :  { %1137 = vmatprep.subr.bf16.mxu1 %v2313_v61  ;;  %1178 = vmatprep.subr.bf16.mxu0 %v2315_v62 }
 0x382   :  { %v949_v50 = vpop.f32.mrb[20].mxu1  ;;  %v990_v60 = vpop.f32.mrb[28].mxu0 }
 0x383   :  { %v997_v51 = vadd.f32 %v949_v50, %v2473_v0  ;;  %v999_v3 = vadd.f32 %v990_v60, %v2475_v2  ;;  %v951_v1 = vpop.f32.mrb[21].mxu1  ;;  %v992_v52 = vpop.f32.mrb[29].mxu0 }
 0x384   :  { %v998_v55 = vadd.f32 %v951_v1, %v2478_v7  ;;  %v1000_v56 = vadd.f32 %v992_v52, %v2481_v12  ;;  %v953_v58 = vpop.f32.mrb[22].mxu1  ;;  %v994_v21 = vpop.f32.mrb[30].mxu0 }
 0x385   :  { %v1808_v59 = vmul.f32 -1.442695, %v997_v51  ;;  %v954_v43 = vpop.f32.mrb[23].mxu1  ;;  %v995_v54 = vpop.f32.mrb[31].mxu0  ;;  %v1810_v46 = vmul.f32 -1.442695, %v999_v3 }
 0x386   :  { %v1809_v47 = vmul.f32 -1.442695, %v998_v55 }
 0x387   :  { %1995 = vpow2.f32 %v1808_v59 }
 0x388   :  { %1997 = vpow2.f32 %v1809_v47 }
 0x389   :  { %1999 = vtanh.f32 %v1000_v56 }
 0x38a   :  { %2001 = vpow2.f32 %v1810_v46 }
 0x391   :  { %v1996_v57 = vpop.eup %1995 }
 0x392   :  { %v1010_v15 = vadd.f32 1.0, %v1996_v57  ;;  %v1998_v0 = vpop.eup %1997 }
 0x393   :  { %v1011_v2 = vadd.f32 1.0, %v1998_v0  ;;  %v2000_v7 = vpop.eup %1999 }
 0x394   :  { %2003 = vrcp.f32 %v1010_v15  ;;  %v2002_v4 = vpop.eup %2001 }
 0x395   :  { %2005 = vrcp.f32 %v1011_v2  ;;  %v1012_v60 = vadd.f32 1.0, %v2002_v4 }
 0x397   :  { %2007 = vrcp.f32 %v1012_v60 }
 0x39e   :  { %v2004_v12 = vpop.eup %2003 }
 0x39f   :  { %v1021_v49 = vmul.f32 %v2004_v12, %v2000_v7  ;;  %v2006_v50 = vpop.eup %2005 }
 0x3a0   :  { %v1020_v51 = vmul.f32 %v2006_v50, %v2547_v33 }
 0x3a1   :  { %v2008_v3 = vpop.eup %2007 }
 0x3a2   :  { %v2589_v1 = vadd.f32 %v1021_v49, %v1020_v51 }
 0x3a4   :  { %2009 = vtanh.f32 %v2589_v1 }
 0x3ae   :  { %v2010_v52 = vpop.eup %2009 }
 0x3af   :  { %v1024_v55 = vmul.f32 %v2010_v52, %v2008_v3 }
 0x3b1   :  { %v1025_v56 = vpack.c.bf16 %v1024_v55, %v1024_v55 }
 0x3b3   :  { %1059 = vmatmul.mubr.bf16.vlgmr.msra.gmra.mrb[24].mxu1 %v1025_v56  ;;  %1100 = vmatmul.mubr.bf16.vlgmr.msra.gmra.mrb[32].mxu0 %v1025_v56 }
 0x3b4   :  { %1138 = vmatpush1.bf16.msra.mxu1 %v2319_v5  ;;  %1179 = vmatpush1.bf16.msra.mxu0 %v2321_v6 }
 0x3b5   :  { %1139 = vmatprep.subr.bf16.mxu1 %v2323_v8  ;;  %1180 = vmatprep.subr.bf16.mxu0 %v2325_v9 }
 0x3b6   :  { %1169 = vmatprep.mubr.bf16.mxu1 %v2850_v16  ;;  %1210 = vmatprep.mubr.bf16.mxu0 %v2850_v16 }
 0x3b8   :  { %1140 = vmatpush1.bf16.msra.mxu1 %v2329_v10  ;;  %1181 = vmatpush1.bf16.msra.mxu0 %v2331_v11 }
 0x3b9   :  { %1141 = vmatprep.subr.bf16.mxu1 %v2335_v13  ;;  %1182 = vmatprep.subr.bf16.mxu0 %v2337_v14 }
 0x3bc   :  { %1142 = vmatpush1.bf16.msra.mxu1 %v2343_v19  ;;  %1183 = vmatpush1.bf16.msra.mxu0 %v2345_v20 }
 0x3bd   :  { %1143 = vmatprep.subr.bf16.mxu1 %v2349_v22  ;;  %1184 = vmatprep.subr.bf16.mxu0 %v2351_v23 }
 0x3c0   :  { %1144 = vmatpush1.bf16.msra.mxu1 %v2355_v24  ;;  %1185 = vmatpush1.bf16.msra.mxu0 %v2357_v25 }
 0x3c1   :  { %1145 = vmatprep.subr.bf16.mxu1 %v2361_v26  ;;  %1186 = vmatprep.subr.bf16.mxu0 %v2363_v27 }
 0x3c4   :  { %1146 = vmatpush1.bf16.msra.mxu1 %v2369_v28  ;;  %1187 = vmatpush1.bf16.msra.mxu0 %v2371_v29 }
 0x3c5   :  { %1147 = vmatprep.subr.bf16.mxu1 %v2375_v30  ;;  %1188 = vmatprep.subr.bf16.mxu0 %v2377_v31 }
 0x3c8   :  { %1148 = vmatpush1.bf16.msra.mxu1 %v2381_v32  ;;  %1189 = vmatpush1.bf16.msra.mxu0 %v2383_v34 }
 0x3c9   :  { %1149 = vmatprep.subr.bf16.mxu1 %v2387_v35  ;;  %1190 = vmatprep.subr.bf16.mxu0 %v2389_v36 }
 0x3cc   :  { %1150 = vmatpush1.bf16.msra.mxu1 %v2395_v37  ;;  %1191 = vmatpush1.bf16.msra.mxu0 %v2397_v38 }
 0x3cd   :  { %1151 = vmatprep.subr.bf16.mxu1 %v2401_v39  ;;  %1192 = vmatprep.subr.bf16.mxu0 %v2403_v40 }
 0x3d0   :  { %1152 = vmatpush1.bf16.msra.mxu1 %v2407_v41  ;;  %1193 = vmatpush1.bf16.msra.mxu0 %v2409_v42 }
 0x3d1   :  { %1248 = vmatprep.subr.bf16.mxu1 %v2313_v61  ;;  %1289 = vmatprep.subr.bf16.mxu0 %v2315_v62 }
 0x486   :  { %v1060_v33 = vpop.f32.mrb[24].mxu1  ;;  %v1101_v58 = vpop.f32.mrb[32].mxu0 }
 0x487   :  { %v1108_v21 = vadd.f32 %v1060_v33, %v2483_v17  ;;  %v1110_v59 = vadd.f32 %v1101_v58, %v2485_v18  ;;  %v1062_v43 = vpop.f32.mrb[25].mxu1  ;;  %v1103_v54 = vpop.f32.mrb[33].mxu0 }
 0x488   :  { %v1109_v47 = vadd.f32 %v1062_v43, %v2488_v44  ;;  %v1111_v46 = vadd.f32 %v1103_v54, %v2491_v45  ;;  %v1064_v57 = vpop.f32.mrb[26].mxu1  ;;  %v1105_v15 = vpop.f32.mrb[34].mxu0 }
 0x489   :  { %v1811_v0 = vmul.f32 -1.442695, %v1108_v21  ;;  %v1065_v2 = vpop.f32.mrb[27].mxu1  ;;  %v1106_v7 = vpop.f32.mrb[35].mxu0  ;;  %v1813_v12 = vmul.f32 -1.442695, %v1110_v59 }
 0x48a   :  { %v1812_v4 = vmul.f32 -1.442695, %v1109_v47  ;;  %v2851_v15 = vld [vmem:[#allocation9_spill] sm:$0xff]  ;;  %v2852_v2 = vld [vmem:[#allocation10_spill] sm:$0xff] }
 0x48b   :  { %2011 = vpow2.f32 %v1811_v0 }
 0x48c   :  { %2013 = vpow2.f32 %v1812_v4 }
 0x48d   :  { %2015 = vtanh.f32 %v1111_v46 }
 0x48e   :  { %2017 = vpow2.f32 %v1813_v12 }
 0x495   :  { %v2012_v49 = vpop.eup %2011 }
 0x496   :  { %v1121_v50 = vadd.f32 1.0, %v2012_v49  ;;  %v2014_v17 = vpop.eup %2013 }
 0x497   :  { %v1122_v18 = vadd.f32 1.0, %v2014_v17  ;;  %v2016_v44 = vpop.eup %2015 }
 0x498   :  { %2019 = vrcp.f32 %v1121_v50  ;;  %v2018_v60 = vpop.eup %2017 }
 0x499   :  { %2021 = vrcp.f32 %v1122_v18  ;;  %v1123_v52 = vadd.f32 1.0, %v2018_v60 }
 0x49b   :  { %2023 = vrcp.f32 %v1123_v52 }
 0x4a2   :  { %v2020_v45 = vpop.eup %2019 }
 0x4a3   :  { %v1132_v51 = vmul.f32 %v2020_v45, %v2016_v44  ;;  %v2022_v3 = vpop.eup %2021 }
 0x4a4   :  { %v1131_v55 = vmul.f32 %v2022_v3, %v2589_v1 }
 0x4a5   :  { %v2024_v33 = vpop.eup %2023 }
 0x4a6   :  { %v2631_v56 = vadd.f32 %v1132_v51, %v1131_v55 }
 0x4a8   :  { %2025 = vtanh.f32 %v2631_v56 }
 0x4b2   :  { %v2026_v58 = vpop.eup %2025 }
 0x4b3   :  { %v1135_v21 = vmul.f32 %v2026_v58, %v2024_v33 }
 0x4b5   :  { %v1136_v59 = vpack.c.bf16 %v1135_v21, %v1135_v21 }
 0x4b7   :  { %1170 = vmatmul.mubr.bf16.vlgmr.msra.gmra.mrb[28].mxu1 %v1136_v59  ;;  %1211 = vmatmul.mubr.bf16.vlgmr.msra.gmra.mrb[36].mxu0 %v1136_v59 }
 0x4b8   :  { %1249 = vmatpush1.bf16.msra.mxu1 %v2319_v5  ;;  %1290 = vmatpush1.bf16.msra.mxu0 %v2321_v6 }
 0x4b9   :  { %1250 = vmatprep.subr.bf16.mxu1 %v2323_v8  ;;  %1291 = vmatprep.subr.bf16.mxu0 %v2325_v9 }
 0x4ba   :  { %1280 = vmatprep.mubr.bf16.mxu1 %v2850_v16  ;;  %1321 = vmatprep.mubr.bf16.mxu0 %v2850_v16 }
 0x4bc   :  { %1251 = vmatpush1.bf16.msra.mxu1 %v2329_v10  ;;  %1292 = vmatpush1.bf16.msra.mxu0 %v2331_v11 }
 0x4bd   :  { %1252 = vmatprep.subr.bf16.mxu1 %v2335_v13  ;;  %1293 = vmatprep.subr.bf16.mxu0 %v2337_v14 }
 0x4c0   :  { %1253 = vmatpush1.bf16.msra.mxu1 %v2343_v19  ;;  %1294 = vmatpush1.bf16.msra.mxu0 %v2345_v20 }
 0x4c1   :  { %1254 = vmatprep.subr.bf16.mxu1 %v2349_v22  ;;  %1295 = vmatprep.subr.bf16.mxu0 %v2351_v23 }
 0x4c4   :  { %1255 = vmatpush1.bf16.msra.mxu1 %v2355_v24  ;;  %1296 = vmatpush1.bf16.msra.mxu0 %v2357_v25 }
 0x4c5   :  { %1256 = vmatprep.subr.bf16.mxu1 %v2361_v26  ;;  %1297 = vmatprep.subr.bf16.mxu0 %v2363_v27 }
 0x4c8   :  { %1257 = vmatpush1.bf16.msra.mxu1 %v2369_v28  ;;  %1298 = vmatpush1.bf16.msra.mxu0 %v2371_v29 }
 0x4c9   :  { %1258 = vmatprep.subr.bf16.mxu1 %v2375_v30  ;;  %1299 = vmatprep.subr.bf16.mxu0 %v2377_v31 }
 0x4cc   :  { %1259 = vmatpush1.bf16.msra.mxu1 %v2381_v32  ;;  %1300 = vmatpush1.bf16.msra.mxu0 %v2383_v34 }
 0x4cd   :  { %1260 = vmatprep.subr.bf16.mxu1 %v2387_v35  ;;  %1301 = vmatprep.subr.bf16.mxu0 %v2389_v36 }
 0x4d0   :  { %1261 = vmatpush1.bf16.msra.mxu1 %v2395_v37  ;;  %1302 = vmatpush1.bf16.msra.mxu0 %v2397_v38 }
 0x4d1   :  { %1262 = vmatprep.subr.bf16.mxu1 %v2401_v39  ;;  %1303 = vmatprep.subr.bf16.mxu0 %v2403_v40 }
 0x4d4   :  { %1263 = vmatpush1.bf16.msra.mxu1 %v2407_v41  ;;  %1304 = vmatpush1.bf16.msra.mxu0 %v2409_v42 }
 0x4d5   :  { %1359 = vmatprep.subr.bf16.mxu1 %v2313_v61  ;;  %1400 = vmatprep.subr.bf16.mxu0 %v2315_v62 }
 0x58a   :  { %v1171_v1 = vpop.f32.mrb[28].mxu1  ;;  %v1212_v43 = vpop.f32.mrb[36].mxu0 }
 0x58b   :  { %v1219_v54 = vadd.f32 %v1171_v1, %v2493_v48  ;;  %v1221_v47 = vadd.f32 %v1212_v43, %v2495_v53  ;;  %v1173_v46 = vpop.f32.mrb[29].mxu1  ;;  %v1214_v57 = vpop.f32.mrb[37].mxu0 }
 0x58c   :  { %v1220_v0 = vadd.f32 %v1173_v46, %v2851_v15  ;;  %v1222_v7 = vadd.f32 %v1214_v57, %v2852_v2  ;;  %v1175_v4 = vpop.f32.mrb[30].mxu1  ;;  %v1216_v12 = vpop.f32.mrb[38].mxu0 }
 0x58d   :  { %v1814_v49 = vmul.f32 -1.442695, %v1219_v54  ;;  %v1176_v50 = vpop.f32.mrb[31].mxu1  ;;  %v1217_v17 = vpop.f32.mrb[39].mxu0  ;;  %v1816_v44 = vmul.f32 -1.442695, %v1221_v47 }
 0x58e   :  { %v1815_v18 = vmul.f32 -1.442695, %v1220_v0 }
 0x58f   :  { %2027 = vpow2.f32 %v1814_v49 }
 0x590   :  { %2029 = vpow2.f32 %v1815_v18 }
 0x591   :  { %2031 = vtanh.f32 %v1222_v7 }
 0x592   :  { %2033 = vpow2.f32 %v1816_v44 }
 0x599   :  { %v2028_v60 = vpop.eup %2027 }
 0x59a   :  { %v1232_v45 = vadd.f32 1.0, %v2028_v60  ;;  %v2030_v48 = vpop.eup %2029 }
 0x59b   :  { %v1233_v53 = vadd.f32 1.0, %v2030_v48  ;;  %v2032_v51 = vpop.eup %2031 }
 0x59c   :  { %2035 = vrcp.f32 %v1232_v45  ;;  %v2034_v3 = vpop.eup %2033 }
 0x59d   :  { %2037 = vrcp.f32 %v1233_v53  ;;  %v1234_v58 = vadd.f32 1.0, %v2034_v3  ;;  %v2718_v53 = vld [vmem:[#allocation5] ss:$16 sps:$4 sm:$0xff]   ;;  %v2724_v3 = vld [vmem:[#allocation5 + $0x24] ss:$16 sps:$4 sm:$0xff]  }
 0x59f   :  { %2039 = vrcp.f32 %v1234_v58  ;;  %v2738_v58 = vld [vmem:[#allocation5 + $0x44] ss:$16 sps:$4 sm:$0xff]  }
 0x5a6   :  { %v2036_v52 = vpop.eup %2035 }
 0x5a7   :  { %v1243_v55 = vmul.f32 %v2036_v52, %v2032_v51  ;;  %v2038_v33 = vpop.eup %2037  ;;  %v2721_v51 = vld [vmem:[#allocation5 + $0x8] ss:$16 sps:$4 sm:$0xff]   ;;  %v2727_v52 = vld [vmem:[#allocation5 + $0x2c] ss:$16 sps:$4 sm:$0xff]  }
 0x5a8   :  { %v1242_v21 = vmul.f32 %v2038_v33, %v2631_v56  ;;  %v2735_v33 = vld [vmem:[#allocation5 + $0x28] ss:$16 sps:$4 sm:$0xff]  }
 0x5a9   :  { %v2040_v1 = vpop.eup %2039 }
 0x5aa   :  { %v2673_v59 = vadd.f32 %v1243_v55, %v1242_v21  ;;  %v2732_v55 = vld [vmem:[#allocation5 + $0x20] ss:$16 sps:$4 sm:$0xff]   ;;  %v2741_v21 = vld [vmem:[#allocation5 + $0x4c] ss:$16 sps:$4 sm:$0xff]  }
 0x5ac   :  { %2041 = vtanh.f32 %v2673_v59 }
 0x5b6   :  { %v2042_v43 = vpop.eup %2041 }
 0x5b7   :  { %v1246_v54 = vmul.f32 %v2042_v43, %v2040_v1  ;;  %v2747_v1 = vld [vmem:[#allocation5 + $0x48] ss:$16 sps:$4 sm:$0xff]   ;;  %v2750_v43 = vld [vmem:[#allocation5 + $0x64] ss:$16 sps:$4 sm:$0xff]  }
 0x5b9   :  { %v1247_v47 = vpack.c.bf16 %v1246_v54, %v1246_v54  ;;  %v2753_v54 = vld [vmem:[#allocation5 + $0x6c] ss:$16 sps:$4 sm:$0xff]  }
 0x5bb   :  { %1281 = vmatmul.mubr.bf16.vlgmr.msra.gmra.mrb[32].mxu1 %v1247_v47  ;;  %1322 = vmatmul.mubr.bf16.vlgmr.msra.gmra.mrb[40].mxu0 %v1247_v47  ;;  %v2756_v47 = vld [vmem:[#allocation5 + $0x60] ss:$16 sps:$4 sm:$0xff]  }
 0x5bc   :  { %1360 = vmatpush1.bf16.msra.mxu1 %v2319_v5  ;;  %1401 = vmatpush1.bf16.msra.mxu0 %v2321_v6 }
 0x5bd   :  { %1361 = vmatprep.subr.bf16.mxu1 %v2323_v8  ;;  %1402 = vmatprep.subr.bf16.mxu0 %v2325_v9  ;;  %v2853_v8 = vld [vmem:[#allocation11_spill] sm:$0xff] }
 0x5be   :  { %1391 = vmatprep.mubr.bf16.mxu1 %v2850_v16  ;;  %1432 = vmatprep.mubr.bf16.mxu0 %v2850_v16 }
 0x5c0   :  { %1362 = vmatpush1.bf16.msra.mxu1 %v2329_v10  ;;  %1403 = vmatpush1.bf16.msra.mxu0 %v2331_v11  ;;  %v2854_v10 = vld [vmem:[#allocation12_spill] sm:$0xff] }
 0x5c1   :  { %1363 = vmatprep.subr.bf16.mxu1 %v2335_v13  ;;  %1404 = vmatprep.subr.bf16.mxu0 %v2337_v14 }
 0x5c4   :  { %1364 = vmatpush1.bf16.msra.mxu1 %v2343_v19  ;;  %1405 = vmatpush1.bf16.msra.mxu0 %v2345_v20  ;;  %v2855_v19 = vld [vmem:[#allocation13_spill] sm:$0xff] }
 0x5c5   :  { %1365 = vmatprep.subr.bf16.mxu1 %v2349_v22  ;;  %1406 = vmatprep.subr.bf16.mxu0 %v2351_v23  ;;  %v2856_v22 = vld [vmem:[#allocation14_spill] sm:$0xff] }
 0x5c8   :  { %1366 = vmatpush1.bf16.msra.mxu1 %v2355_v24  ;;  %1407 = vmatpush1.bf16.msra.mxu0 %v2357_v25 }
 0x5c9   :  { %1367 = vmatprep.subr.bf16.mxu1 %v2361_v26  ;;  %1408 = vmatprep.subr.bf16.mxu0 %v2363_v27 }
 0x5cc   :  { %1368 = vmatpush1.bf16.msra.mxu1 %v2369_v28  ;;  %1409 = vmatpush1.bf16.msra.mxu0 %v2371_v29 }
 0x5cd   :  { %1369 = vmatprep.subr.bf16.mxu1 %v2375_v30  ;;  %1410 = vmatprep.subr.bf16.mxu0 %v2377_v31 }
 0x5d0   :  { %1370 = vmatpush1.bf16.msra.mxu1 %v2381_v32  ;;  %1411 = vmatpush1.bf16.msra.mxu0 %v2383_v34 }
 0x5d1   :  { %1371 = vmatprep.subr.bf16.mxu1 %v2387_v35  ;;  %1412 = vmatprep.subr.bf16.mxu0 %v2389_v36 }
 0x5d4   :  { %1372 = vmatpush1.bf16.msra.mxu1 %v2395_v37  ;;  %1413 = vmatpush1.bf16.msra.mxu0 %v2397_v38 }
 0x5d5   :  { %1373 = vmatprep.subr.bf16.mxu1 %v2401_v39  ;;  %1414 = vmatprep.subr.bf16.mxu0 %v2403_v40 }
 0x5d8   :  { %1374 = vmatpush1.bf16.msra.mxu1 %v2407_v41  ;;  %1415 = vmatpush1.bf16.msra.mxu0 %v2409_v42 }
 0x5d9   :  { %1470 = vmatprep.subr.bf16.mxu1 %v2313_v61  ;;  %1511 = vmatprep.subr.bf16.mxu0 %v2315_v62 }
 0x68e   :  { %v1282_v5 = vpop.f32.mrb[32].mxu1  ;;  %v1323_v6 = vpop.f32.mrb[40].mxu0 }
 0x68f   :  { %v1330_v9 = vadd.f32 %v1282_v5, %v2853_v8  ;;  %v1332_v11 = vadd.f32 %v1323_v6, %v2854_v10  ;;  %v1284_v13 = vpop.f32.mrb[33].mxu1  ;;  %v1325_v14 = vpop.f32.mrb[41].mxu0  ;;  %v2759_v5 = vld [vmem:[#allocation5 + $0x68] ss:$16 sps:$4 sm:$0xff]   ;;  %v2762_v6 = vld [vmem:[#allocation5 + $0x84] ss:$16 sps:$4 sm:$0xff]  }
 0x690   :  { %v1331_v20 = vadd.f32 %v1284_v13, %v2855_v19  ;;  %v1333_v23 = vadd.f32 %v1325_v14, %v2856_v22  ;;  %v1286_v24 = vpop.f32.mrb[34].mxu1  ;;  %v1327_v25 = vpop.f32.mrb[42].mxu0  ;;  %v2765_v8 = vld [vmem:[#allocation5 + $0x8c] ss:$16 sps:$4 sm:$0xff]  }
 0x691   :  { %v1817_v26 = vmul.f32 -1.442695, %v1330_v9  ;;  %v1287_v27 = vpop.f32.mrb[35].mxu1  ;;  %v1328_v56 = vpop.f32.mrb[43].mxu0  ;;  %v1819_v62 = vmul.f32 -1.442695, %v1332_v11 }
 0x692   :  { %v1818_v61 = vmul.f32 -1.442695, %v1331_v20  ;;  %v2859_v9 = vld [vmem:[#allocation17_spill] sm:$0xff]  ;;  %v2860_v10 = vld [vmem:[#allocation18_spill] sm:$0xff] }
 0x693   :  { %2043 = vpow2.f32 %v1817_v26 }
 0x694   :  { %2045 = vpow2.f32 %v1818_v61 }
 0x695   :  { %2047 = vtanh.f32 %v1333_v23 }
 0x696   :  { %2049 = vpow2.f32 %v1819_v62 }
 0x69d   :  { %v2044_v46 = vpop.eup %2043 }
 0x69e   :  { %v1343_v57 = vadd.f32 1.0, %v2044_v46  ;;  %v2046_v15 = vpop.eup %2045 }
 0x69f   :  { %v1344_v0 = vadd.f32 1.0, %v2046_v15  ;;  %v2048_v2 = vpop.eup %2047 }
 0x6a0   :  { %2051 = vrcp.f32 %v1343_v57  ;;  %v2050_v7 = vpop.eup %2049 }
 0x6a1   :  { %2053 = vrcp.f32 %v1344_v0  ;;  %v1345_v50 = vadd.f32 1.0, %v2050_v7 }
 0x6a3   :  { %2055 = vrcp.f32 %v1345_v50  ;;  %v2128_v50 = vld [vmem:[#allocation5 + $0xac] ss:$16 sps:$4 sm:$0xff]  }
 0x6aa   :  { %v2052_v4 = vpop.eup %2051 }
 0x6ab   :  { %v1354_v12 = vmul.f32 %v2052_v4, %v2048_v2  ;;  %v2054_v49 = vpop.eup %2053 }
 0x6ac   :  { %v1353_v17 = vmul.f32 %v2054_v49, %v2673_v59  ;;  %v2744_v59 = vld [vmem:[#allocation5 + $0x40] ss:$16 sps:$4 sm:$0xff]   ;;  %v2127_v49 = vld [vmem:[#allocation5 + $0xa4] ss:$16 sps:$4 sm:$0xff]  }
 0x6ad   :  { %v2056_v44 = vpop.eup %2055 }
 0x6ae   :  { %v2715_v18 = vadd.f32 %v1354_v12, %v1353_v17  ;;  %v2126_v12 = vld [vmem:[#allocation5 + $0x88] ss:$16 sps:$4 sm:$0xff]   ;;  %v2129_v17 = vld [vmem:[#allocation5 + $0xa0] ss:$16 sps:$4 sm:$0xff]  }
 0x6b0   :  { %2057 = vtanh.f32 %v2715_v18 }
 0x6ba   :  { %v2058_v60 = vpop.eup %2057 }
 0x6bb   :  { %v1357_v45 = vmul.f32 %v2058_v60, %v2056_v44  ;;  %v2131_v44 = vld [vmem:[#allocation5 + $0xc4] ss:$16 sps:$4 sm:$0xff]   ;;  %v2132_v60 = vld [vmem:[#allocation5 + $0xcc] ss:$16 sps:$4 sm:$0xff]  }
 0x6bd   :  { %v1358_v48 = vpack.c.bf16 %v1357_v45, %v1357_v45  ;;  %v2133_v45 = vld [vmem:[#allocation5 + $0xc0] ss:$16 sps:$4 sm:$0xff]  }
 0x6bf   :  { %1392 = vmatmul.mubr.bf16.vlgmr.msra.gmra.mrb[36].mxu1 %v1358_v48  ;;  %1433 = vmatmul.mubr.bf16.vlgmr.msra.gmra.mrb[44].mxu0 %v1358_v48  ;;  %v2134_v48 = vld [vmem:[#allocation5 + $0xc8] ss:$16 sps:$4 sm:$0xff]  }
 0x6c0   :  { %1471 = vmatpush1.bf16.msra.mxu1 %v2718_v53  ;;  %1512 = vmatpush1.bf16.msra.mxu0 %v2721_v51 }
 0x6c1   :  { %1472 = vmatprep.subr.bf16.mxu1 %v2724_v3  ;;  %1513 = vmatprep.subr.bf16.mxu0 %v2727_v52 }
 0x6c2   :  { %1502 = vmatprep.mubr.bf16.mxu1 %v2850_v16  ;;  %1543 = vmatprep.mubr.bf16.mxu0 %v2850_v16 }
 0x6c4   :  { %1473 = vmatpush1.bf16.msra.mxu1 %v2732_v55  ;;  %1514 = vmatpush1.bf16.msra.mxu0 %v2735_v33 }
 0x6c5   :  { %1474 = vmatprep.subr.bf16.mxu1 %v2738_v58  ;;  %1515 = vmatprep.subr.bf16.mxu0 %v2741_v21 }
 0x6c8   :  { %1475 = vmatpush1.bf16.msra.mxu1 %v2744_v59  ;;  %1516 = vmatpush1.bf16.msra.mxu0 %v2747_v1 }
 0x6c9   :  { %1476 = vmatprep.subr.bf16.mxu1 %v2750_v43  ;;  %1517 = vmatprep.subr.bf16.mxu0 %v2753_v54 }
 0x6cc   :  { %1477 = vmatpush1.bf16.msra.mxu1 %v2756_v47  ;;  %1518 = vmatpush1.bf16.msra.mxu0 %v2759_v5 }
 0x6cd   :  { %1478 = vmatprep.subr.bf16.mxu1 %v2762_v6  ;;  %1519 = vmatprep.subr.bf16.mxu0 %v2765_v8 }
 0x6d0   :  { %1479 = vmatpush1.bf16.msra.mxu1 %v2369_v28  ;;  %1520 = vmatpush1.bf16.msra.mxu0 %v2371_v29  ;;  %v2123_v28 = vld [vmem:[#allocation5 + $0x4] ss:$16 sps:$4 sm:$0xff]   ;;  %v2124_v29 = vld [vmem:[#allocation5 + $0xc] ss:$16 sps:$4 sm:$0xff]  }
 0x6d1   :  { %1480 = vmatprep.subr.bf16.mxu1 %v2375_v30  ;;  %1521 = vmatprep.subr.bf16.mxu0 %v2377_v31 }
 0x6d4   :  { %1481 = vmatpush1.bf16.msra.mxu1 %v2381_v32  ;;  %1522 = vmatpush1.bf16.msra.mxu0 %v2383_v34  ;;  %v2857_v32 = vld [vmem:[#allocation15_spill] sm:$0xff] }
 0x6d5   :  { %1482 = vmatprep.subr.bf16.mxu1 %v2387_v35  ;;  %1523 = vmatprep.subr.bf16.mxu0 %v2389_v36  ;;  %v2858_v35 = vld [vmem:[#allocation16_spill] sm:$0xff] }
 0x6d8   :  { %1483 = vmatpush1.bf16.msra.mxu1 %v2395_v37  ;;  %1524 = vmatpush1.bf16.msra.mxu0 %v2397_v38 }
 0x6d9   :  { %1484 = vmatprep.subr.bf16.mxu1 %v2401_v39  ;;  %1525 = vmatprep.subr.bf16.mxu0 %v2403_v40 }
 0x6dc   :  { %1485 = vmatpush1.bf16.msra.mxu1 %v2407_v41  ;;  %1526 = vmatpush1.bf16.msra.mxu0 %v2409_v42 }
 0x6dd   :  { %1581 = vmatprep.subr.bf16.mxu1 %v2123_v28  ;;  %1622 = vmatprep.subr.bf16.mxu0 %v2124_v29 }
 0x792   :  { %v1393_v30 = vpop.f32.mrb[36].mxu1  ;;  %v1434_v31 = vpop.f32.mrb[44].mxu0 }
 0x793   :  { %v1441_v34 = vadd.f32 %v1393_v30, %v2857_v32  ;;  %v1443_v36 = vadd.f32 %v1434_v31, %v2858_v35  ;;  %v1395_v37 = vpop.f32.mrb[37].mxu1  ;;  %v1436_v38 = vpop.f32.mrb[45].mxu0 }
 0x794   :  { %v1442_v39 = vadd.f32 %v1395_v37, %v2859_v9  ;;  %v1444_v40 = vadd.f32 %v1436_v38, %v2860_v10  ;;  %v1397_v11 = vpop.f32.mrb[38].mxu1  ;;  %v1438_v41 = vpop.f32.mrb[46].mxu0 }
 0x795   :  { %v1820_v13 = vmul.f32 -1.442695, %v1441_v34  ;;  %v1398_v42 = vpop.f32.mrb[39].mxu1  ;;  %v1439_v14 = vpop.f32.mrb[47].mxu0  ;;  %v1822_v20 = vmul.f32 -1.442695, %v1443_v36 }
 0x796   :  { %v1821_v19 = vmul.f32 -1.442695, %v1442_v39 }
 0x797   :  { %2059 = vpow2.f32 %v1820_v13 }
 0x798   :  { %2061 = vpow2.f32 %v1821_v19 }
 0x799   :  { %2063 = vtanh.f32 %v1444_v40 }
 0x79a   :  { %2065 = vpow2.f32 %v1822_v20 }
 0x7a1   :  { %v2060_v22 = vpop.eup %2059 }
 0x7a2   :  { %v1454_v23 = vadd.f32 1.0, %v2060_v22  ;;  %v2062_v24 = vpop.eup %2061 }
 0x7a3   :  { %v1455_v25 = vadd.f32 1.0, %v2062_v24  ;;  %v2064_v26 = vpop.eup %2063 }
 0x7a4   :  { %2067 = vrcp.f32 %v1454_v23  ;;  %v2066_v27 = vpop.eup %2065 }
 0x7a5   :  { %2069 = vrcp.f32 %v1455_v25  ;;  %v1456_v46 = vadd.f32 1.0, %v2066_v27  ;;  %v2865_v27 = vld [vmem:[#allocation23_spill] sm:$0xff] }
 0x7a7   :  { %2071 = vrcp.f32 %v1456_v46  ;;  %v2866_v46 = vld [vmem:[#allocation24_spill] sm:$0xff] }
 0x7ae   :  { %v2068_v56 = vpop.eup %2067 }
 0x7af   :  { %v1465_v61 = vmul.f32 %v2068_v56, %v2064_v26  ;;  %v2070_v62 = vpop.eup %2069 }
 0x7b0   :  { %v1464_v57 = vmul.f32 %v2070_v62, %v2715_v18  ;;  %v2130_v18 = vld [vmem:[#allocation5 + $0xa8] ss:$16 sps:$4 sm:$0xff]  }
 0x7b1   :  { %v2072_v0 = vpop.eup %2071 }
 0x7b2   :  { %v2787_v15 = vadd.f32 %v1465_v61, %v1464_v57 }
 0x7b4   :  { %2073 = vtanh.f32 %v2787_v15 }
 0x7be   :  { %v2074_v2 = vpop.eup %2073 }
 0x7bf   :  { %v1468_v7 = vmul.f32 %v2074_v2, %v2072_v0 }
 0x7c1   :  { %v1469_v4 = vpack.c.bf16 %v1468_v7, %v1468_v7 }
 0x7c3   :  { %1503 = vmatmul.mubr.bf16.vlgmr.msra.gmra.mrb[40].mxu1 %v1469_v4  ;;  %1544 = vmatmul.mubr.bf16.vlgmr.msra.gmra.mrb[48].mxu0 %v1469_v4 }
 0x7c4   :  { %1582 = vmatpush1.bf16.msra.mxu1 %v2718_v53  ;;  %1623 = vmatpush1.bf16.msra.mxu0 %v2721_v51  ;;  %v2135_v53 = vld [vmem:[#allocation5 + $0xe4] ss:$16 sps:$4 sm:$0xff]   ;;  %v2136_v51 = vld [vmem:[#allocation5 + $0xec] ss:$16 sps:$4 sm:$0xff]  }
 0x7c5   :  { %1583 = vmatprep.subr.bf16.mxu1 %v2724_v3  ;;  %1624 = vmatprep.subr.bf16.mxu0 %v2727_v52  ;;  %v2137_v3 = vld [vmem:[#allocation5 + $0xe0] ss:$16 sps:$4 sm:$0xff]   ;;  %v2138_v52 = vld [vmem:[#allocation5 + $0xe8] ss:$16 sps:$4 sm:$0xff]  }
 0x7c6   :  { %1613 = vmatprep.mubr.bf16.mxu1 %v2850_v16  ;;  %1654 = vmatprep.mubr.bf16.mxu0 %v2850_v16  ;;  %v2125_v16 = vld [vmem:[#allocation5 + $0x80] ss:$16 sps:$4 sm:$0xff]  }
 0x7c8   :  { %1584 = vmatpush1.bf16.msra.mxu1 %v2732_v55  ;;  %1625 = vmatpush1.bf16.msra.mxu0 %v2735_v33 }
 0x7c9   :  { %1585 = vmatprep.subr.bf16.mxu1 %v2738_v58  ;;  %1626 = vmatprep.subr.bf16.mxu0 %v2741_v21  ;;  %v2861_v58 = vld [vmem:[#allocation19_spill] sm:$0xff] }
 0x7cc   :  { %1586 = vmatpush1.bf16.msra.mxu1 %v2744_v59  ;;  %1627 = vmatpush1.bf16.msra.mxu0 %v2747_v1  ;;  %v2862_v59 = vld [vmem:[#allocation20_spill] sm:$0xff] }
 0x7cd   :  { %1587 = vmatprep.subr.bf16.mxu1 %v2750_v43  ;;  %1628 = vmatprep.subr.bf16.mxu0 %v2753_v54 }
 0x7d0   :  { %1588 = vmatpush1.bf16.msra.mxu1 %v2756_v47  ;;  %1629 = vmatpush1.bf16.msra.mxu0 %v2759_v5  ;;  %v2863_v47 = vld [vmem:[#allocation21_spill] sm:$0xff] }
 0x7d1   :  { %1589 = vmatprep.subr.bf16.mxu1 %v2762_v6  ;;  %1630 = vmatprep.subr.bf16.mxu0 %v2765_v8  ;;  %v2864_v6 = vld [vmem:[#allocation22_spill] sm:$0xff] }
 0x7d4   :  { %1590 = vmatpush1.bf16.msra.mxu1 %v2125_v16  ;;  %1631 = vmatpush1.bf16.msra.mxu0 %v2126_v12 }
 0x7d5   :  { %1591 = vmatprep.subr.bf16.mxu1 %v2127_v49  ;;  %1632 = vmatprep.subr.bf16.mxu0 %v2128_v50 }
 0x7d8   :  { %1592 = vmatpush1.bf16.msra.mxu1 %v2129_v17  ;;  %1633 = vmatpush1.bf16.msra.mxu0 %v2130_v18 }
 0x7d9   :  { %1593 = vmatprep.subr.bf16.mxu1 %v2131_v44  ;;  %1634 = vmatprep.subr.bf16.mxu0 %v2132_v60 }
 0x7dc   :  { %1594 = vmatpush1.bf16.msra.mxu1 %v2133_v45  ;;  %1635 = vmatpush1.bf16.msra.mxu0 %v2134_v48 }
 0x7dd   :  { %1595 = vmatprep.subr.bf16.mxu1 %v2135_v53  ;;  %1636 = vmatprep.subr.bf16.mxu0 %v2136_v51 }
 0x7e0   :  { %1596 = vmatpush1.bf16.msra.mxu1 %v2137_v3  ;;  %1637 = vmatpush1.bf16.msra.mxu0 %v2138_v52 }
 0x896   :  { %v1504_v55 = vpop.f32.mrb[40].mxu1  ;;  %v1545_v33 = vpop.f32.mrb[48].mxu0 }
 0x897   :  { %v1552_v21 = vadd.f32 %v1504_v55, %v2861_v58  ;;  %v1554_v1 = vadd.f32 %v1545_v33, %v2862_v59  ;;  %v1506_v43 = vpop.f32.mrb[41].mxu1  ;;  %v1547_v54 = vpop.f32.mrb[49].mxu0 }
 0x898   :  { %v1553_v5 = vadd.f32 %v1506_v43, %v2863_v47  ;;  %v1555_v8 = vadd.f32 %v1547_v54, %v2864_v6  ;;  %v1508_v28 = vpop.f32.mrb[42].mxu1  ;;  %v1549_v29 = vpop.f32.mrb[50].mxu0  ;;  %v1830_v43 = vld [vmem:[#allocation2] ss:$0 sm:$0xff] }
 0x899   :  { %v1823_v30 = vmul.f32 -1.442695, %v1552_v21  ;;  %v1509_v31 = vpop.f32.mrb[43].mxu1  ;;  %v1550_v32 = vpop.f32.mrb[51].mxu0  ;;  %v1825_v35 = vmul.f32 -1.442695, %v1554_v1 }
 0x89a   :  { %v1824_v34 = vmul.f32 -1.442695, %v1553_v5  ;;  %v1829_v21 = vld [vmem:[%s2828_s5] ss:$0 sm:$0xff] }
 0x89b   :  { %2075 = vpow2.f32 %v1823_v30 }
 0x89c   :  { %2077 = vpow2.f32 %v1824_v34 }
 0x89d   :  { %2079 = vtanh.f32 %v1555_v8 }
 0x89e   :  { %2081 = vpow2.f32 %v1825_v35 }
 0x8a5   :  { %v2076_v36 = vpop.eup %2075 }
 0x8a6   :  { %v1565_v37 = vadd.f32 1.0, %v2076_v36  ;;  %v2078_v38 = vpop.eup %2077 }
 0x8a7   :  { %v1566_v9 = vadd.f32 1.0, %v2078_v38  ;;  %v2080_v39 = vpop.eup %2079 }
 0x8a8   :  { %2083 = vrcp.f32 %v1565_v37  ;;  %v2082_v10 = vpop.eup %2081 }
 0x8a9   :  { %2085 = vrcp.f32 %v1566_v9  ;;  %v1567_v13 = vadd.f32 1.0, %v2082_v10 }
 0x8ab   :  { %2087 = vrcp.f32 %v1567_v13 }
 0x8b2   :  { %v2084_v40 = vpop.eup %2083 }
 0x8b3   :  { %v1576_v11 = vmul.f32 %v2084_v40, %v2080_v39  ;;  %v2086_v41 = vpop.eup %2085 }
 0x8b4   :  { %v1575_v42 = vmul.f32 %v2086_v41, %v2787_v15  ;;  %v2867_v15 = vld [vmem:[#allocation25_spill] sm:$0xff] }
 0x8b5   :  { %v2088_v19 = vpop.eup %2087 }
 0x8b6   :  { %v1577_v14 = vadd.f32 %v1576_v11, %v1575_v42 }
 0x8b8   :  { %2089 = vtanh.f32 %v1577_v14 }
 0x8c2   :  { %v2090_v20 = vpop.eup %2089 }
 0x8c3   :  { %v1579_v22 = vmul.f32 %v2090_v20, %v2088_v19 }
 0x8c5   :  { %v1580_v23 = vpack.c.bf16 %v1579_v22, %v1579_v22 }
 0x8c7   :  { %1614 = vmatmul.mubr.bf16.vlgmr.msra.gmra.mrb[44].mxu1 %v1580_v23  ;;  %1655 = vmatmul.mubr.bf16.vlgmr.msra.gmra.mrb[52].mxu0 %v1580_v23 }
 0x99a   :  { %v1615_v24 = vpop.f32.mrb[44].mxu1  ;;  %v1656_v25 = vpop.f32.mrb[52].mxu0 }
 0x99b   :  { %v1663_v26 = vadd.f32 %v1615_v24, %v2533_v63  ;;  %v1665_v56 = vadd.f32 %v1656_v25, %v2865_v27  ;;  %v1617_v61 = vpop.f32.mrb[45].mxu1  ;;  %v1658_v62 = vpop.f32.mrb[53].mxu0 }
 0x99c   :  { %v1664_v57 = vadd.f32 %v1617_v61, %v2866_v46  ;;  %v1666_v0 = vadd.f32 %v1658_v62, %v2867_v15  ;;  %v1619_v2 = vpop.f32.mrb[46].mxu1  ;;  %v1660_v7 = vpop.f32.mrb[54].mxu0 }
 0x99d   :  { %v1826_v4 = vmul.f32 -1.442695, %v1663_v26  ;;  %v1620_v16 = vpop.f32.mrb[47].mxu1  ;;  %v1661_v12 = vpop.f32.mrb[55].mxu0  ;;  %v1828_v50 = vmul.f32 -1.442695, %v1665_v56 }
 0x99e   :  { %v1827_v49 = vmul.f32 -1.442695, %v1664_v57 }
 0x99f   :  { %2091 = vpow2.f32 %v1826_v4 }
 0x9a0   :  { %2093 = vpow2.f32 %v1827_v49 }
 0x9a1   :  { %2095 = vtanh.f32 %v1666_v0 }
 0x9a2   :  { %2097 = vpow2.f32 %v1828_v50 }
 0x9a9   :  { %v2092_v17 = vpop.eup %2091 }
 0x9aa   :  { %v1676_v18 = vadd.f32 1.0, %v2092_v17  ;;  %v2094_v63 = vpop.eup %2093 }
 0x9ab   :  { %v1677_v44 = vadd.f32 1.0, %v2094_v63  ;;  %v2096_v60 = vpop.eup %2095 }
 0x9ac   :  { %2099 = vrcp.f32 %v1676_v18  ;;  %v2098_v45 = vpop.eup %2097 }
 0x9ad   :  { %2101 = vrcp.f32 %v1677_v44  ;;  %v1678_v3 = vadd.f32 1.0, %v2098_v45 }
 0x9af   :  { %2103 = vrcp.f32 %v1678_v3 }
 0x9b6   :  { %v2100_v48 = vpop.eup %2099 }
 0x9b7   :  { %v1687_v53 = vmul.f32 %v2100_v48, %v2096_v60  ;;  %v2102_v51 = vpop.eup %2101 }
 0x9b8   :  { %v1686_v52 = vmul.f32 %v2102_v51, %v1577_v14 }
 0x9b9   :  { %v2104_v33 = vpop.eup %2103 }
 0x9ba   :  { %v1688_v55 = vadd.f32 %v1687_v53, %v1686_v52 }
 0x9bc   :  { %2105 = vtanh.f32 %v1688_v55 }
 0x9c6   :  { %v2106_v58 = vpop.eup %2105 }
 0x9c7   :  { %v1690_v59 = vmul.f32 %v2106_v58, %v2104_v33 }
 0x9c9   :  { %v1698_v1 = vmul.f32 %v1829_v21, %v1690_v59 }
 0x9cb   :  { %1699 = vadd.xlane.f32.xlu0 %v1698_v1 }
 0xa58   :  { %v1700_v54 = vpop.xlane.xlu0 %1699 }
 0xa59   :  { %v1708_v47 = vadd.f32 %v1830_v43, %v1700_v54 }
 0xa5b   :  { %1710 = vst.msk [vmem:[%s2830_s7] sm:$0xff] %vm1709_vm12, %v1708_v47 }
 0xa5c   :  { %1715 = vsyncpa [#allocation4], 1 }
 0xa5d   :  { %1716 = vsyncpa [#allocation6], 1 }

</bundles_post_ra>
